<compile_context>
chip_gen: v7x
topology: tpu7x:2x2x1
jax: 0.10.0
libtpu: 0.0.40
codegen_flags: <defaults>
</compile_context>

<pallas_src>
import jax
import jax.numpy as jnp
import numpy as np
from jax.experimental import pallas as pl
from jax.experimental.pallas import tpu as pltpu

# ---- scaled-down but structurally identical hyper-parameters ---------------
NUM_NEURONS = 16                       # np.load(data_dir).shape[1]
NUM_CLASSES = 2                        # len(np.unique(tag_mat))
NUM_TAG = NUM_NEURONS * NUM_CLASSES    # 32
HIDDEN = 32                            # original module uses 512 (scaled down)
FC1 = 128
NUM_CHARACTERS = 4
FC2 = NUM_CHARACTERS * 3               # 12
OUT_LANES = 128                        # lane-dense kernel output width
BN_EPS = 1e-5
LEAKY_SLOPE = 0.01                     # nn.LeakyReLU default

# At HIDDEN=512 set jnp.bfloat16 (halves weight VMEM / HBM->VMEM DMA, native
# MXU rate on v6e/v7x); f32 accumulation is kept via preferred_element_type.
WEIGHT_DTYPE = jnp.float32

# Per-step time-chunk length (upper bound; actual chunk is the largest divisor
# of T not exceeding this).  4 here so the toy T=8 exercises the cross-chunk
# state carry; raise to 16-32 at production sequence lengths.
MAX_CHUNK_T = 4

# With time-chunking VMEM is constant in T: weights + double-buffered x/xp
# chunks + head weights.  32 MiB is ample here and still leaves headroom on
# v7x (64 MiB physical); required explicitly on v5e (16 MiB default).
VMEM_LIMIT_BYTES = 32 * 1024 * 1024


# ---------------------------- Pallas kernel ---------------------------------
def movie_lstm_kernel(
    x_ref,        # (CT*B, I)  current time-chunk, time-major flattened
    tag_ref,      # (B, NUM_TAG)
    wih0_ref,     # (I, 4H)    gate order (i, f, o, g)
    b0_ref,       # (1, 4H)    b_ih_l0 + b_hh_l0, reordered
    whh0_ref,     # (H, 4H)
    wih1_ref,     # (H, 4H)
    whh1_ref,     # (H, 4H)
    b1_ref,       # (1, 4H)    b_ih_l1 + b_hh_l1, reordered
    w1h_ref,      # (H, FC1)   fc1 block for lstm output, BN folded
    w1t_ref,      # (NUM_TAG, FC1)  fc1 block for region_tag, BN folded
    bfc1_ref,     # (1, FC1)   fc1 bias * bn_scale + bn_shift
    w2_ref,       # (FC1, OUT_LANES)  fc2, zero-padded past FC2
    bfc2_ref,     # (1, OUT_LANES)
    p1_ref,       # (OUT_LANES, OUT_LANES) in-group cyclic permutation (+1)
    p2_ref,       # (OUT_LANES, OUT_LANES) in-group cyclic permutation (+2)
    gsum_ref,     # (OUT_LANES, OUT_LANES) block-diagonal group-sum matrix
    out_ref,      # (B, OUT_LANES) grouped log-softmax, lane-dense
    h1_s, c1_s, h2_s, c2_s,   # (B, H)  f32 scratch carried across chunks
    g1p_s,                    # (B, 4H) f32 carried layer-1 partial (h2@Whh1+b1)
):
    H = HIDDEN
    B = out_ref.shape[0]
    CT = x_ref.shape[0] // B
    c = pl.program_id(0)
    n_chunks = pl.num_programs(0)
    wdt = whh0_ref.dtype

    # hoist the (1,4H)->(B,4H) broadcast (no CSE inside loops)
    b1 = jnp.broadcast_to(b1_ref[...], (B, 4 * H))

    @pl.when(c == 0)
    def _():
        zeros = jnp.zeros((B, H), jnp.float32)
        h1_s[...] = zeros
        c1_s[...] = zeros
        h2_s[...] = zeros
        c2_s[...] = zeros
        g1p_s[...] = b1          # h2(-1)=0  =>  h2 @ W_hh1 + b1 == b1

    # ---- layer-0 input projection for THIS chunk only ----------------------
    # (CT*B, I) @ (I, 4H): keeps VMEM constant in T, overlaps with the
    # previous chunk's writeback / next chunk's x DMA via the grid pipeline.
    xp = jnp.dot(x_ref[...].astype(wdt), wih0_ref[...],
                 preferred_element_type=jnp.float32) + b0_ref[...]

    whh0 = whh0_ref[...]
    wih1 = wih1_ref[...]
    whh1 = whh1_ref[...]

    def activate(gates, c_prev):
        # gate layout (i, f, o, g): one sigmoid slab + one tanh slab.
        sig = jax.nn.sigmoid(gates[:, :3 * H])
        g = jnp.tanh(gates[:, 3 * H:])
        c_new = sig[:, H:2 * H] * c_prev + sig[:, :H] * g
        h_new = sig[:, 2 * H:3 * H] * jnp.tanh(c_new)
        return h_new, c_new

    h1 = h1_s[...]
    c1 = c1_s[...]
    h2 = h2_s[...]
    c2 = c2_s[...]
    g1p = g1p_s[...]

    # Bounded unroll: at most MAX_CHUNK_T steps per grid iteration (gives the
    # scheduler cross-step visibility without unbounded vreg pressure).
    for t in range(CT):
        # layer 0: only the recurrent matmul is on the serial path
        g0 = xp[t * B:(t + 1) * B] + jnp.dot(
            h1.astype(wdt), whh0, preferred_element_type=jnp.float32)
        h1, c1 = activate(g0, c1)
        # inter-layer LSTM dropout (p=0.5) is identity in eval mode
        # layer 1: h2-half was precomputed (g1p) -> only h1 @ W_ih1 is serial
        g1 = jnp.dot(h1.astype(wdt), wih1,
                     preferred_element_type=jnp.float32) + g1p
        h2, c2 = activate(g1, c2)
        # off the serial path: next step's h2-half of the layer-1 gates
        # (overlaps with the next step's layer-0 matmul / activations)
        g1p = jnp.dot(h2.astype(wdt), whh1,
                      preferred_element_type=jnp.float32) + b1

    h1_s[...] = h1
    c1_s[...] = c1
    h2_s[...] = h2
    c2_s[...] = c2
    g1p_s[...] = g1p

    # ---- head (last chunk only): fc1(+BN folded) + LeakyReLU + fc2 ---------
    @pl.when(c == n_chunks - 1)
    def _():
        z = (jnp.dot(h2.astype(wdt), w1h_ref[...],
                     preferred_element_type=jnp.float32)
             + jnp.dot(tag_ref[...].astype(wdt), w1t_ref[...],
                       preferred_element_type=jnp.float32)
             + bfc1_ref[...])
        z = jnp.where(z >= 0, z, LEAKY_SLOPE * z)          # LeakyReLU
        # fc1_dropout (p=0.2) is identity in eval mode
        z = jnp.dot(z.astype(wdt), w2_ref[...],
                    preferred_element_type=jnp.float32) + bfc2_ref[...]

        # grouped log-softmax over lane-groups of 3 (vectorized, lane-dense):
        # per-group max via two in-group cyclic permutations, per-group sum via
        # a block-diagonal ones matrix; padding lanes carry identity (finite).
        z1 = jnp.dot(z, p1_ref[...], preferred_element_type=jnp.float32)
        z2 = jnp.dot(z, p2_ref[...], preferred_element_type=jnp.float32)
        m = jnp.maximum(z, jnp.maximum(z1, z2))
        e = jnp.exp(z - m)
        s = jnp.dot(e, gsum_ref[...], preferred_element_type=jnp.float32)
        out_ref[...] = z - m - jnp.log(s)                  # ONE dense store


# ----------------- one-time parameter packing (host / cached) ----------------
def prepare_params(p, dtype=WEIGHT_DTYPE):
    """Transpose, reorder gates to (i,f,o,g), fold biases and eval-mode
    BatchNorm, pad fc2 to a lane-dense output, and build the grouped-softmax
    helper matrices.  Called ONCE at parameter-load time."""
    H = HIDDEN
    perm = np.concatenate([np.arange(0, H), np.arange(H, 2 * H),
                           np.arange(3 * H, 4 * H), np.arange(2 * H, 3 * H)])

    def reorder_w(w):            # torch (4H, in) -> (in, 4H), cols (i,f,o,g)
        return jnp.asarray(w).T[:, perm]

    def reorder_b(b):
        return jnp.asarray(b)[perm]

    wih0 = reorder_w(p["wih0"]).astype(dtype)
    whh0 = reorder_w(p["whh0"]).astype(dtype)
    b0 = reorder_b(p["bih0"] + p["bhh0"])[None, :].astype(jnp.float32)
    wih1 = reorder_w(p["wih1"]).astype(dtype)
    whh1 = reorder_w(p["whh1"]).astype(dtype)
    b1 = reorder_b(p["bih1"] + p["bhh1"])[None, :].astype(jnp.float32)

    # eval-mode BatchNorm1d folded into fc1
    scale = p["gamma"] / jnp.sqrt(p["rvar"] + BN_EPS)
    shift = p["beta"] - p["rmean"] * scale
    w1 = p["w1"]                                   # (FC1, H + NUM_TAG)
    w1h = (w1[:, :H].T * scale[None, :]).astype(dtype)
    w1t = (w1[:, H:].T * scale[None, :]).astype(dtype)
    bfc1 = (p["bf1"] * scale + shift)[None, :].astype(jnp.float32)

    # fc2 padded to OUT_LANES output lanes (lane-dense final store)
    w2p = jnp.zeros((FC1, OUT_LANES), jnp.float32).at[:, :FC2].set(p["w2"].T)
    w2p = w2p.astype(dtype)
    bfc2 = jnp.zeros((1, OUT_LANES), jnp.float32).at[0, :FC2].set(p["bf2"])

    # grouped log-softmax helpers (groups of 3 lanes; identity on padding)
    P1 = np.zeros((OUT_LANES, OUT_LANES), np.float32)
    P2 = np.zeros((OUT_LANES, OUT_LANES), np.float32)
    G = np.zeros((OUT_LANES, OUT_LANES), np.float32)
    for g in range(FC2 // 3):
        for r in range(3):
            P1[3 * g + (r + 1) % 3, 3 * g + r] = 1.0
            P2[3 * g + (r + 2) % 3, 3 * g + r] = 1.0
        G[3 * g:3 * g + 3, 3 * g:3 * g + 3] = 1.0
    pad = np.arange(FC2, OUT_LANES)
    P1[pad, pad] = 1.0
    P2[pad, pad] = 1.0
    G[pad, pad] = 1.0

    return dict(wih0=wih0, b0=b0, whh0=whh0, wih1=wih1, whh1=whh1, b1=b1,
                w1h=w1h, w1t=w1t, bfc1=bfc1, w2=w2p, bfc2=bfc2,
                p1=jnp.asarray(P1), p2=jnp.asarray(P2), gsum=jnp.asarray(G))


# ------------------------------ wrapper --------------------------------------
def _pick_chunk_t(T, max_chunk=MAX_CHUNK_T):
    """Largest divisor of T that does not exceed max_chunk."""
    for c in range(min(T, max_chunk), 0, -1):
        if T % c == 0:
            return c
    return 1


def movie_lstm_forward(x, region_tag, w):
    """x: (B, T, NUM_NEURONS), region_tag: (B, NUM_TAG). Returns (B, C, 3)."""
    B, T, I = x.shape
    B_pad = max(8, -(-B // 8) * 8)         # pad batch to a full f32 sublane
    CT = _pick_chunk_t(T)
    n_chunks = T // CT

    x = x.astype(jnp.float32)
    tag = region_tag.astype(jnp.float32)
    if B_pad != B:
        x = jnp.pad(x, ((0, B_pad - B), (0, 0), (0, 0)))
        tag = jnp.pad(tag, ((0, B_pad - B), (0, 0)))

    # time-major flatten so per-step slabs are contiguous, sublane-aligned rows
    x_tm = jnp.transpose(x, (1, 0, 2)).reshape(T * B_pad, I)

    def full_spec(arr):           # resident block == full array, never re-DMA'd
        return pl.BlockSpec(arr.shape, lambda c: (0,) * arr.ndim)

    weights = (w["wih0"], w["b0"], w["whh0"], w["wih1"], w["whh1"], w["b1"],
               w["w1h"], w["w1t"], w["bfc1"], w["w2"], w["bfc2"],
               w["p1"], w["p2"], w["gsum"])

    in_specs = ([pl.BlockSpec((CT * B_pad, I), lambda c: (c, 0)),   # x chunks
                 full_spec(tag)]
                + [full_spec(a) for a in weights])

    out2d = pl.pallas_call(
        movie_lstm_kernel,
        out_shape=jax.ShapeDtypeStruct((B_pad, OUT_LANES), jnp.float32),
        grid_spec=pltpu.PrefetchScalarGridSpec(
            num_scalar_prefetch=0,
            grid=(n_chunks,),
            in_specs=in_specs,
            out_specs=pl.BlockSpec((B_pad, OUT_LANES), lambda c: (0, 0)),
            scratch_shapes=[pltpu.VMEM((B_pad, HIDDEN), jnp.float32)] * 4
                         + [pltpu.VMEM((B_pad, 4 * HIDDEN), jnp.float32)],
        ),
        compiler_params=pltpu.CompilerParams(
            dimension_semantics=("arbitrary",),     # serial recurrence axis
            vmem_limit_bytes=VMEM_LIMIT_BYTES),
    )(x_tm, tag, *weights)

    return out2d[:B, :FC2].reshape(B, NUM_CHARACTERS, 3)


# ---------------------- deterministic parameter init -------------------------
def init_params(key):
    ks = jax.random.split(key, 12)

    def u(k, shape, bound):
        return jax.random.uniform(k, shape, jnp.float32, -bound, bound)

    sh = 1.0 / np.sqrt(HIDDEN)
    s1 = 1.0 / np.sqrt(HIDDEN + NUM_TAG)
    s2 = 1.0 / np.sqrt(FC1)
    return dict(
        # LSTM layer 0 (PyTorch gate order: i, f, g, o)
        wih0=u(ks[0], (4 * HIDDEN, NUM_NEURONS), sh),
        whh0=u(ks[1], (4 * HIDDEN, HIDDEN), sh),
        bih0=u(ks[2], (4 * HIDDEN,), sh),
        bhh0=u(ks[3], (4 * HIDDEN,), sh),
        # LSTM layer 1
        wih1=u(ks[4], (4 * HIDDEN, HIDDEN), sh),
        whh1=u(ks[5], (4 * HIDDEN, HIDDEN), sh),
        bih1=u(ks[6], (4 * HIDDEN,), sh),
        bhh1=u(ks[7], (4 * HIDDEN,), sh),
        # fc1 / fc2
        w1=u(ks[8], (FC1, HIDDEN + NUM_TAG), s1),
        bf1=u(ks[9], (FC1,), s1),
        w2=u(ks[10], (FC2, FC1), s2),
        bf2=u(ks[11], (FC2,), s2),
        # BatchNorm1d(128) — fresh-module defaults
        gamma=jnp.ones((FC1,), jnp.float32),
        beta=jnp.zeros((FC1,), jnp.float32),
        rmean=jnp.zeros((FC1,), jnp.float32),
        rvar=jnp.ones((FC1,), jnp.float32),
    )


# ------------------------- pure-JAX reference --------------------------------
def reference_forward(x, tag, p):
    x = x.astype(jnp.float32)
    B, T, _ = x.shape

    def cell(x_t, h, c, wih, whh, b):
        g = x_t @ wih.T + h @ whh.T + b
        i = jax.nn.sigmoid(g[:, :HIDDEN])
        f = jax.nn.sigmoid(g[:, HIDDEN:2 * HIDDEN])
        gg = jnp.tanh(g[:, 2 * HIDDEN:3 * HIDDEN])
        o = jax.nn.sigmoid(g[:, 3 * HIDDEN:])
        c = f * c + i * gg
        return o * jnp.tanh(c), c

    h1 = c1 = h2 = c2 = jnp.zeros((B, HIDDEN), jnp.float32)
    for t in range(T):
        h1, c1 = cell(x[:, t], h1, c1, p["wih0"], p["whh0"], p["bih0"] + p["bhh0"])
        h2, c2 = cell(h1, h2, c2, p["wih1"], p["whh1"], p["bih1"] + p["bhh1"])
    z = jnp.concatenate([h2, tag.astype(jnp.float32)], axis=1) @ p["w1"].T + p["bf1"]
    z = (z - p["rmean"]) / jnp.sqrt(p["rvar"] + BN_EPS) * p["gamma"] + p["beta"]
    z = jnp.where(z >= 0, z, LEAKY_SLOPE * z)
    z = z @ p["w2"].T + p["bf2"]
    z = z.reshape(B, NUM_CHARACTERS, 3)
    return jax.nn.log_softmax(z, axis=2)


if __name__ == "__main__":
    key = jax.random.PRNGKey(0)
    kp, kx, kt = jax.random.split(key, 3)

    B, T = 2, 8
    params = init_params(kp)
    packed = prepare_params(params)      # one-time weight packing / folding

    x = jax.random.normal(kx, (B, T, NUM_NEURONS), jnp.float32)
    region_tag = jax.random.normal(kt, (B, NUM_TAG), jnp.float32)

    fwd = jax.jit(movie_lstm_forward)
    out = jax.block_until_ready(fwd(x, region_tag, packed))

    ref = reference_forward(x, region_tag, params)
    np.testing.assert_allclose(np.asarray(out), np.asarray(ref), rtol=1e-4, atol=1e-4)
    assert out.shape == (B, NUM_CHARACTERS, 3)
    print("KERNEL_OK")
</pallas_src>

<mosaic_0001>
module attributes {stable_mosaic.version = 11 : i64} {
  func.func @movie_lstm_kernel(%arg0: i32, %arg1: memref<32x16xf32, #tpu.memory_space<vmem>>, %arg2: memref<8x32xf32, #tpu.memory_space<vmem>>, %arg3: memref<16x128xf32, #tpu.memory_space<vmem>>, %arg4: memref<1x128xf32, #tpu.memory_space<vmem>>, %arg5: memref<32x128xf32, #tpu.memory_space<vmem>>, %arg6: memref<32x128xf32, #tpu.memory_space<vmem>>, %arg7: memref<32x128xf32, #tpu.memory_space<vmem>>, %arg8: memref<1x128xf32, #tpu.memory_space<vmem>>, %arg9: memref<32x128xf32, #tpu.memory_space<vmem>>, %arg10: memref<32x128xf32, #tpu.memory_space<vmem>>, %arg11: memref<1x128xf32, #tpu.memory_space<vmem>>, %arg12: memref<128x128xf32, #tpu.memory_space<vmem>>, %arg13: memref<1x128xf32, #tpu.memory_space<vmem>>, %arg14: memref<128x128xf32, #tpu.memory_space<vmem>>, %arg15: memref<128x128xf32, #tpu.memory_space<vmem>>, %arg16: memref<128x128xf32, #tpu.memory_space<vmem>>, %arg17: memref<8x128xf32, #tpu.memory_space<vmem>>, %arg18: memref<8x32xf32, #tpu.memory_space<vmem>>, %arg19: memref<8x32xf32, #tpu.memory_space<vmem>>, %arg20: memref<8x32xf32, #tpu.memory_space<vmem>>, %arg21: memref<8x32xf32, #tpu.memory_space<vmem>>, %arg22: memref<8x128xf32, #tpu.memory_space<vmem>>) attributes {dimension_semantics = [#tpu.dimension_semantics<arbitrary>], iteration_bounds = array<i64: 2>, scalar_prefetch = 0 : i64, scratch_operands = 5 : i64, tpu.core_type = #tpu.core_type<tc>, window_params = [{transform_indices = @transform_0, window_bounds = array<i64: 32, 16>}, {pipeline_mode = #tpu.pipeline_mode<synchronous>, transform_indices = @transform_1, window_bounds = array<i64: 8, 32>}, {pipeline_mode = #tpu.pipeline_mode<synchronous>, transform_indices = @transform_2, window_bounds = array<i64: 16, 128>}, {pipeline_mode = #tpu.pipeline_mode<synchronous>, transform_indices = @transform_3, window_bounds = array<i64: 1, 128>}, {pipeline_mode = #tpu.pipeline_mode<synchronous>, transform_indices = @transform_4, window_bounds = array<i64: 32, 128>}, {pipeline_mode = #tpu.pipeline_mode<synchronous>, transform_indices = @transform_5, window_bounds = array<i64: 32, 128>}, {pipeline_mode = #tpu.pipeline_mode<synchronous>, transform_indices = @transform_6, window_bounds = array<i64: 32, 128>}, {pipeline_mode = #tpu.pipeline_mode<synchronous>, transform_indices = @transform_7, window_bounds = array<i64: 1, 128>}, {pipeline_mode = #tpu.pipeline_mode<synchronous>, transform_indices = @transform_8, window_bounds = array<i64: 32, 128>}, {pipeline_mode = #tpu.pipeline_mode<synchronous>, transform_indices = @transform_9, window_bounds = array<i64: 32, 128>}, {pipeline_mode = #tpu.pipeline_mode<synchronous>, transform_indices = @transform_10, window_bounds = array<i64: 1, 128>}, {pipeline_mode = #tpu.pipeline_mode<synchronous>, transform_indices = @transform_11, window_bounds = array<i64: 128, 128>}, {pipeline_mode = #tpu.pipeline_mode<synchronous>, transform_indices = @transform_12, window_bounds = array<i64: 1, 128>}, {pipeline_mode = #tpu.pipeline_mode<synchronous>, transform_indices = @transform_13, window_bounds = array<i64: 128, 128>}, {pipeline_mode = #tpu.pipeline_mode<synchronous>, transform_indices = @transform_14, window_bounds = array<i64: 128, 128>}, {pipeline_mode = #tpu.pipeline_mode<synchronous>, transform_indices = @transform_15, window_bounds = array<i64: 128, 128>}, {pipeline_mode = #tpu.pipeline_mode<synchronous>, transform_indices = @transform_16, window_bounds = array<i64: 8, 128>}]} {
    %c0 = arith.constant 0 : index
    %c0_0 = arith.constant 0 : index
    %0 = vector.load %arg8[%c0, %c0_0] : memref<1x128xf32, #tpu.memory_space<vmem>>, vector<1x128xf32>
    %1 = vector.shape_cast %0 : vector<1x128xf32> to vector<1x128xf32>
    %2 = vector.broadcast %1 : vector<1x128xf32> to vector<8x128xf32>
    %c0_i32 = arith.constant 0 : i32
    %3 = arith.cmpi eq, %arg0, %c0_i32 : i32
    %4 = arith.extui %3 : i1 to i32
    %c0_i32_1 = arith.constant 0 : i32
    %5 = arith.cmpi ne, %4, %c0_i32_1 : i32
    scf.if %5 {
      %cst_53 = arith.constant 0.000000e+00 : f32
      %183 = vector.broadcast %cst_53 : f32 to vector<8x32xf32>
      %c0_54 = arith.constant 0 : index
      %c0_55 = arith.constant 0 : index
      %184 = vector.load %arg18[%c0_54, %c0_55] : memref<8x32xf32, #tpu.memory_space<vmem>>, vector<8x32xf32>
      tpu.vector_store %arg18[%c0_54, %c0_55], %183 {strides = array<i32>} : memref<8x32xf32, #tpu.memory_space<vmem>>, vector<8x32xf32>,
      %c0_56 = arith.constant 0 : index
      %c0_57 = arith.constant 0 : index
      %185 = vector.load %arg19[%c0_56, %c0_57] : memref<8x32xf32, #tpu.memory_space<vmem>>, vector<8x32xf32>
      tpu.vector_store %arg19[%c0_56, %c0_57], %183 {strides = array<i32>} : memref<8x32xf32, #tpu.memory_space<vmem>>, vector<8x32xf32>,
      %c0_58 = arith.constant 0 : index
      %c0_59 = arith.constant 0 : index
      %186 = vector.load %arg20[%c0_58, %c0_59] : memref<8x32xf32, #tpu.memory_space<vmem>>, vector<8x32xf32>
      tpu.vector_store %arg20[%c0_58, %c0_59], %183 {strides = array<i32>} : memref<8x32xf32, #tpu.memory_space<vmem>>, vector<8x32xf32>,
      %c0_60 = arith.constant 0 : index
      %c0_61 = arith.constant 0 : index
      %187 = vector.load %arg21[%c0_60, %c0_61] : memref<8x32xf32, #tpu.memory_space<vmem>>, vector<8x32xf32>
      tpu.vector_store %arg21[%c0_60, %c0_61], %183 {strides = array<i32>} : memref<8x32xf32, #tpu.memory_space<vmem>>, vector<8x32xf32>,
      %c0_62 = arith.constant 0 : index
      %c0_63 = arith.constant 0 : index
      %188 = vector.load %arg22[%c0_62, %c0_63] : memref<8x128xf32, #tpu.memory_space<vmem>>, vector<8x128xf32>
      tpu.vector_store %arg22[%c0_62, %c0_63], %2 {strides = array<i32>} : memref<8x128xf32, #tpu.memory_space<vmem>>, vector<8x128xf32>,
    } else {
    }
    %c0_2 = arith.constant 0 : index
    %c0_3 = arith.constant 0 : index
    %6 = vector.load %arg1[%c0_2, %c0_3] : memref<32x16xf32, #tpu.memory_space<vmem>>, vector<32x16xf32>
    %c0_4 = arith.constant 0 : index
    %c0_5 = arith.constant 0 : index
    %7 = vector.load %arg3[%c0_4, %c0_5] : memref<16x128xf32, #tpu.memory_space<vmem>>, vector<16x128xf32>
    %cst = arith.constant dense<0.000000e+00> : vector<32x128xf32>
    %8 = tpu.matmul %6, %7, %cst {dimension_numbers = #tpu.dot_dimension_numbers<[1], [0], [0], [1], [0, 0, 1, 1], [], []>} : vector<32x16xf32>, vector<16x128xf32>, vector<32x128xf32> -> vector<32x128xf32>
    %c0_6 = arith.constant 0 : index
    %c0_7 = arith.constant 0 : index
    %9 = vector.load %arg4[%c0_6, %c0_7] : memref<1x128xf32, #tpu.memory_space<vmem>>, vector<1x128xf32>
    %10 = vector.broadcast %9 : vector<1x128xf32> to vector<32x128xf32>
    %11 = arith.addf %8, %10 : vector<32x128xf32>
    %c0_8 = arith.constant 0 : index
    %c0_9 = arith.constant 0 : index
    %12 = vector.load %arg5[%c0_8, %c0_9] : memref<32x128xf32, #tpu.memory_space<vmem>>, vector<32x128xf32>
    %c0_10 = arith.constant 0 : index
    %c0_11 = arith.constant 0 : index
    %13 = vector.load %arg6[%c0_10, %c0_11] : memref<32x128xf32, #tpu.memory_space<vmem>>, vector<32x128xf32>
    %c0_12 = arith.constant 0 : index
    %c0_13 = arith.constant 0 : index
    %14 = vector.load %arg7[%c0_12, %c0_13] : memref<32x128xf32, #tpu.memory_space<vmem>>, vector<32x128xf32>
    %c0_14 = arith.constant 0 : index
    %c0_15 = arith.constant 0 : index
    %15 = vector.load %arg18[%c0_14, %c0_15] : memref<8x32xf32, #tpu.memory_space<vmem>>, vector<8x32xf32>
    %c0_16 = arith.constant 0 : index
    %c0_17 = arith.constant 0 : index
    %16 = vector.load %arg19[%c0_16, %c0_17] : memref<8x32xf32, #tpu.memory_space<vmem>>, vector<8x32xf32>
    %c0_18 = arith.constant 0 : index
    %c0_19 = arith.constant 0 : index
    %17 = vector.load %arg21[%c0_18, %c0_19] : memref<8x32xf32, #tpu.memory_space<vmem>>, vector<8x32xf32>
    %c0_20 = arith.constant 0 : index
    %c0_21 = arith.constant 0 : index
    %18 = vector.load %arg22[%c0_20, %c0_21] : memref<8x128xf32, #tpu.memory_space<vmem>>, vector<8x128xf32>
    %19 = vector.extract_strided_slice %11 {offsets = [0, 0], sizes = [8, 128], strides = [1, 1]} : vector<32x128xf32> to vector<8x128xf32>
    %cst_22 = arith.constant dense<0.000000e+00> : vector<8x128xf32>
    %20 = tpu.matmul %15, %12, %cst_22 {dimension_numbers = #tpu.dot_dimension_numbers<[1], [0], [0], [1], [0, 0, 1, 1], [], []>} : vector<8x32xf32>, vector<32x128xf32>, vector<8x128xf32> -> vector<8x128xf32>
    %21 = arith.addf %19, %20 : vector<8x128xf32>
    %22 = vector.extract_strided_slice %21 {offsets = [0, 0], sizes = [8, 96], strides = [1, 1]} : vector<8x128xf32> to vector<8x96xf32>
    %23 = arith.negf %22 : vector<8x96xf32>
    %24 = math.exp %23 : vector<8x96xf32>
    %cst_23 = arith.constant 1.000000e+00 : f32
    %25 = vector.broadcast %cst_23 : f32 to vector<8x96xf32>
    %26 = arith.addf %25, %24 : vector<8x96xf32>
    %27 = arith.divf %25, %26 : vector<8x96xf32>
    %28 = vector.extract_strided_slice %21 {offsets = [0, 96], sizes = [8, 32], strides = [1, 1]} : vector<8x128xf32> to vector<8x32xf32>
    %29 = math.tanh %28 : vector<8x32xf32>
    %30 = vector.extract_strided_slice %27 {offsets = [0, 32], sizes = [8, 32], strides = [1, 1]} : vector<8x96xf32> to vector<8x32xf32>
    %31 = arith.mulf %30, %16 : vector<8x32xf32>
    %32 = vector.extract_strided_slice %27 {offsets = [0, 0], sizes = [8, 32], strides = [1, 1]} : vector<8x96xf32> to vector<8x32xf32>
    %33 = arith.mulf %32, %29 : vector<8x32xf32>
    %34 = arith.addf %31, %33 : vector<8x32xf32>
    %35 = vector.extract_strided_slice %27 {offsets = [0, 64], sizes = [8, 32], strides = [1, 1]} : vector<8x96xf32> to vector<8x32xf32>
    %36 = math.tanh %34 : vector<8x32xf32>
    %37 = arith.mulf %35, %36 : vector<8x32xf32>
    %cst_24 = arith.constant dense<0.000000e+00> : vector<8x128xf32>
    %38 = tpu.matmul %37, %13, %cst_24 {dimension_numbers = #tpu.dot_dimension_numbers<[1], [0], [0], [1], [0, 0, 1, 1], [], []>} : vector<8x32xf32>, vector<32x128xf32>, vector<8x128xf32> -> vector<8x128xf32>
    %39 = arith.addf %38, %18 : vector<8x128xf32>
    %40 = vector.extract_strided_slice %39 {offsets = [0, 0], sizes = [8, 96], strides = [1, 1]} : vector<8x128xf32> to vector<8x96xf32>
    %41 = arith.negf %40 : vector<8x96xf32>
    %42 = math.exp %41 : vector<8x96xf32>
    %cst_25 = arith.constant 1.000000e+00 : f32
    %43 = vector.broadcast %cst_25 : f32 to vector<8x96xf32>
    %44 = arith.addf %43, %42 : vector<8x96xf32>
    %45 = arith.divf %43, %44 : vector<8x96xf32>
    %46 = vector.extract_strided_slice %39 {offsets = [0, 96], sizes = [8, 32], strides = [1, 1]} : vector<8x128xf32> to vector<8x32xf32>
    %47 = math.tanh %46 : vector<8x32xf32>
    %48 = vector.extract_strided_slice %45 {offsets = [0, 32], sizes = [8, 32], strides = [1, 1]} : vector<8x96xf32> to vector<8x32xf32>
    %49 = arith.mulf %48, %17 : vector<8x32xf32>
    %50 = vector.extract_strided_slice %45 {offsets = [0, 0], sizes = [8, 32], strides = [1, 1]} : vector<8x96xf32> to vector<8x32xf32>
    %51 = arith.mulf %50, %47 : vector<8x32xf32>
    %52 = arith.addf %49, %51 : vector<8x32xf32>
    %53 = vector.extract_strided_slice %45 {offsets = [0, 64], sizes = [8, 32], strides = [1, 1]} : vector<8x96xf32> to vector<8x32xf32>
    %54 = math.tanh %52 : vector<8x32xf32>
    %55 = arith.mulf %53, %54 : vector<8x32xf32>
    %cst_26 = arith.constant dense<0.000000e+00> : vector<8x128xf32>
    %56 = tpu.matmul %55, %14, %cst_26 {dimension_numbers = #tpu.dot_dimension_numbers<[1], [0], [0], [1], [0, 0, 1, 1], [], []>} : vector<8x32xf32>, vector<32x128xf32>, vector<8x128xf32> -> vector<8x128xf32>
    %57 = arith.addf %56, %2 : vector<8x128xf32>
    %58 = vector.extract_strided_slice %11 {offsets = [8, 0], sizes = [8, 128], strides = [1, 1]} : vector<32x128xf32> to vector<8x128xf32>
    %cst_27 = arith.constant dense<0.000000e+00> : vector<8x128xf32>
    %59 = tpu.matmul %37, %12, %cst_27 {dimension_numbers = #tpu.dot_dimension_numbers<[1], [0], [0], [1], [0, 0, 1, 1], [], []>} : vector<8x32xf32>, vector<32x128xf32>, vector<8x128xf32> -> vector<8x128xf32>
    %60 = arith.addf %58, %59 : vector<8x128xf32>
    %61 = vector.extract_strided_slice %60 {offsets = [0, 0], sizes = [8, 96], strides = [1, 1]} : vector<8x128xf32> to vector<8x96xf32>
    %62 = arith.negf %61 : vector<8x96xf32>
    %63 = math.exp %62 : vector<8x96xf32>
    %cst_28 = arith.constant 1.000000e+00 : f32
    %64 = vector.broadcast %cst_28 : f32 to vector<8x96xf32>
    %65 = arith.addf %64, %63 : vector<8x96xf32>
    %66 = arith.divf %64, %65 : vector<8x96xf32>
    %67 = vector.extract_strided_slice %60 {offsets = [0, 96], sizes = [8, 32], strides = [1, 1]} : vector<8x128xf32> to vector<8x32xf32>
    %68 = math.tanh %67 : vector<8x32xf32>
    %69 = vector.extract_strided_slice %66 {offsets = [0, 32], sizes = [8, 32], strides = [1, 1]} : vector<8x96xf32> to vector<8x32xf32>
    %70 = arith.mulf %69, %34 : vector<8x32xf32>
    %71 = vector.extract_strided_slice %66 {offsets = [0, 0], sizes = [8, 32], strides = [1, 1]} : vector<8x96xf32> to vector<8x32xf32>
    %72 = arith.mulf %71, %68 : vector<8x32xf32>
    %73 = arith.addf %70, %72 : vector<8x32xf32>
    %74 = vector.extract_strided_slice %66 {offsets = [0, 64], sizes = [8, 32], strides = [1, 1]} : vector<8x96xf32> to vector<8x32xf32>
    %75 = math.tanh %73 : vector<8x32xf32>
    %76 = arith.mulf %74, %75 : vector<8x32xf32>
    %cst_29 = arith.constant dense<0.000000e+00> : vector<8x128xf32>
    %77 = tpu.matmul %76, %13, %cst_29 {dimension_numbers = #tpu.dot_dimension_numbers<[1], [0], [0], [1], [0, 0, 1, 1], [], []>} : vector<8x32xf32>, vector<32x128xf32>, vector<8x128xf32> -> vector<8x128xf32>
    %78 = arith.addf %77, %57 : vector<8x128xf32>
    %79 = vector.extract_strided_slice %78 {offsets = [0, 0], sizes = [8, 96], strides = [1, 1]} : vector<8x128xf32> to vector<8x96xf32>
    %80 = arith.negf %79 : vector<8x96xf32>
    %81 = math.exp %80 : vector<8x96xf32>
    %cst_30 = arith.constant 1.000000e+00 : f32
    %82 = vector.broadcast %cst_30 : f32 to vector<8x96xf32>
    %83 = arith.addf %82, %81 : vector<8x96xf32>
    %84 = arith.divf %82, %83 : vector<8x96xf32>
    %85 = vector.extract_strided_slice %78 {offsets = [0, 96], sizes = [8, 32], strides = [1, 1]} : vector<8x128xf32> to vector<8x32xf32>
    %86 = math.tanh %85 : vector<8x32xf32>
    %87 = vector.extract_strided_slice %84 {offsets = [0, 32], sizes = [8, 32], strides = [1, 1]} : vector<8x96xf32> to vector<8x32xf32>
    %88 = arith.mulf %87, %52 : vector<8x32xf32>
    %89 = vector.extract_strided_slice %84 {offsets = [0, 0], sizes = [8, 32], strides = [1, 1]} : vector<8x96xf32> to vector<8x32xf32>
    %90 = arith.mulf %89, %86 : vector<8x32xf32>
    %91 = arith.addf %88, %90 : vector<8x32xf32>
    %92 = vector.extract_strided_slice %84 {offsets = [0, 64], sizes = [8, 32], strides = [1, 1]} : vector<8x96xf32> to vector<8x32xf32>
    %93 = math.tanh %91 : vector<8x32xf32>
    %94 = arith.mulf %92, %93 : vector<8x32xf32>
    %cst_31 = arith.constant dense<0.000000e+00> : vector<8x128xf32>
    %95 = tpu.matmul %94, %14, %cst_31 {dimension_numbers = #tpu.dot_dimension_numbers<[1], [0], [0], [1], [0, 0, 1, 1], [], []>} : vector<8x32xf32>, vector<32x128xf32>, vector<8x128xf32> -> vector<8x128xf32>
    %96 = arith.addf %95, %2 : vector<8x128xf32>
    %97 = vector.extract_strided_slice %11 {offsets = [16, 0], sizes = [8, 128], strides = [1, 1]} : vector<32x128xf32> to vector<8x128xf32>
    %cst_32 = arith.constant dense<0.000000e+00> : vector<8x128xf32>
    %98 = tpu.matmul %76, %12, %cst_32 {dimension_numbers = #tpu.dot_dimension_numbers<[1], [0], [0], [1], [0, 0, 1, 1], [], []>} : vector<8x32xf32>, vector<32x128xf32>, vector<8x128xf32> -> vector<8x128xf32>
    %99 = arith.addf %97, %98 : vector<8x128xf32>
    %100 = vector.extract_strided_slice %99 {offsets = [0, 0], sizes = [8, 96], strides = [1, 1]} : vector<8x128xf32> to vector<8x96xf32>
    %101 = arith.negf %100 : vector<8x96xf32>
    %102 = math.exp %101 : vector<8x96xf32>
    %cst_33 = arith.constant 1.000000e+00 : f32
    %103 = vector.broadcast %cst_33 : f32 to vector<8x96xf32>
    %104 = arith.addf %103, %102 : vector<8x96xf32>
    %105 = arith.divf %103, %104 : vector<8x96xf32>
    %106 = vector.extract_strided_slice %99 {offsets = [0, 96], sizes = [8, 32], strides = [1, 1]} : vector<8x128xf32> to vector<8x32xf32>
    %107 = math.tanh %106 : vector<8x32xf32>
    %108 = vector.extract_strided_slice %105 {offsets = [0, 32], sizes = [8, 32], strides = [1, 1]} : vector<8x96xf32> to vector<8x32xf32>
    %109 = arith.mulf %108, %73 : vector<8x32xf32>
    %110 = vector.extract_strided_slice %105 {offsets = [0, 0], sizes = [8, 32], strides = [1, 1]} : vector<8x96xf32> to vector<8x32xf32>
    %111 = arith.mulf %110, %107 : vector<8x32xf32>
    %112 = arith.addf %109, %111 : vector<8x32xf32>
    %113 = vector.extract_strided_slice %105 {offsets = [0, 64], sizes = [8, 32], strides = [1, 1]} : vector<8x96xf32> to vector<8x32xf32>
    %114 = math.tanh %112 : vector<8x32xf32>
    %115 = arith.mulf %113, %114 : vector<8x32xf32>
    %cst_34 = arith.constant dense<0.000000e+00> : vector<8x128xf32>
    %116 = tpu.matmul %115, %13, %cst_34 {dimension_numbers = #tpu.dot_dimension_numbers<[1], [0], [0], [1], [0, 0, 1, 1], [], []>} : vector<8x32xf32>, vector<32x128xf32>, vector<8x128xf32> -> vector<8x128xf32>
    %117 = arith.addf %116, %96 : vector<8x128xf32>
    %118 = vector.extract_strided_slice %117 {offsets = [0, 0], sizes = [8, 96], strides = [1, 1]} : vector<8x128xf32> to vector<8x96xf32>
    %119 = arith.negf %118 : vector<8x96xf32>
    %120 = math.exp %119 : vector<8x96xf32>
    %cst_35 = arith.constant 1.000000e+00 : f32
    %121 = vector.broadcast %cst_35 : f32 to vector<8x96xf32>
    %122 = arith.addf %121, %120 : vector<8x96xf32>
    %123 = arith.divf %121, %122 : vector<8x96xf32>
    %124 = vector.extract_strided_slice %117 {offsets = [0, 96], sizes = [8, 32], strides = [1, 1]} : vector<8x128xf32> to vector<8x32xf32>
    %125 = math.tanh %124 : vector<8x32xf32>
    %126 = vector.extract_strided_slice %123 {offsets = [0, 32], sizes = [8, 32], strides = [1, 1]} : vector<8x96xf32> to vector<8x32xf32>
    %127 = arith.mulf %126, %91 : vector<8x32xf32>
    %128 = vector.extract_strided_slice %123 {offsets = [0, 0], sizes = [8, 32], strides = [1, 1]} : vector<8x96xf32> to vector<8x32xf32>
    %129 = arith.mulf %128, %125 : vector<8x32xf32>
    %130 = arith.addf %127, %129 : vector<8x32xf32>
    %131 = vector.extract_strided_slice %123 {offsets = [0, 64], sizes = [8, 32], strides = [1, 1]} : vector<8x96xf32> to vector<8x32xf32>
    %132 = math.tanh %130 : vector<8x32xf32>
    %133 = arith.mulf %131, %132 : vector<8x32xf32>
    %cst_36 = arith.constant dense<0.000000e+00> : vector<8x128xf32>
    %134 = tpu.matmul %133, %14, %cst_36 {dimension_numbers = #tpu.dot_dimension_numbers<[1], [0], [0], [1], [0, 0, 1, 1], [], []>} : vector<8x32xf32>, vector<32x128xf32>, vector<8x128xf32> -> vector<8x128xf32>
    %135 = arith.addf %134, %2 : vector<8x128xf32>
    %136 = vector.extract_strided_slice %11 {offsets = [24, 0], sizes = [8, 128], strides = [1, 1]} : vector<32x128xf32> to vector<8x128xf32>
    %cst_37 = arith.constant dense<0.000000e+00> : vector<8x128xf32>
    %137 = tpu.matmul %115, %12, %cst_37 {dimension_numbers = #tpu.dot_dimension_numbers<[1], [0], [0], [1], [0, 0, 1, 1], [], []>} : vector<8x32xf32>, vector<32x128xf32>, vector<8x128xf32> -> vector<8x128xf32>
    %138 = arith.addf %136, %137 : vector<8x128xf32>
    %139 = vector.extract_strided_slice %138 {offsets = [0, 0], sizes = [8, 96], strides = [1, 1]} : vector<8x128xf32> to vector<8x96xf32>
    %140 = arith.negf %139 : vector<8x96xf32>
    %141 = math.exp %140 : vector<8x96xf32>
    %cst_38 = arith.constant 1.000000e+00 : f32
    %142 = vector.broadcast %cst_38 : f32 to vector<8x96xf32>
    %143 = arith.addf %142, %141 : vector<8x96xf32>
    %144 = arith.divf %142, %143 : vector<8x96xf32>
    %145 = vector.extract_strided_slice %138 {offsets = [0, 96], sizes = [8, 32], strides = [1, 1]} : vector<8x128xf32> to vector<8x32xf32>
    %146 = math.tanh %145 : vector<8x32xf32>
    %147 = vector.extract_strided_slice %144 {offsets = [0, 32], sizes = [8, 32], strides = [1, 1]} : vector<8x96xf32> to vector<8x32xf32>
    %148 = arith.mulf %147, %112 : vector<8x32xf32>
    %149 = vector.extract_strided_slice %144 {offsets = [0, 0], sizes = [8, 32], strides = [1, 1]} : vector<8x96xf32> to vector<8x32xf32>
    %150 = arith.mulf %149, %146 : vector<8x32xf32>
    %151 = arith.addf %148, %150 : vector<8x32xf32>
    %152 = vector.extract_strided_slice %144 {offsets = [0, 64], sizes = [8, 32], strides = [1, 1]} : vector<8x96xf32> to vector<8x32xf32>
    %153 = math.tanh %151 : vector<8x32xf32>
    %154 = arith.mulf %152, %153 : vector<8x32xf32>
    %cst_39 = arith.constant dense<0.000000e+00> : vector<8x128xf32>
    %155 = tpu.matmul %154, %13, %cst_39 {dimension_numbers = #tpu.dot_dimension_numbers<[1], [0], [0], [1], [0, 0, 1, 1], [], []>} : vector<8x32xf32>, vector<32x128xf32>, vector<8x128xf32> -> vector<8x128xf32>
    %156 = arith.addf %155, %135 : vector<8x128xf32>
    %157 = vector.extract_strided_slice %156 {offsets = [0, 0], sizes = [8, 96], strides = [1, 1]} : vector<8x128xf32> to vector<8x96xf32>
    %158 = arith.negf %157 : vector<8x96xf32>
    %159 = math.exp %158 : vector<8x96xf32>
    %cst_40 = arith.constant 1.000000e+00 : f32
    %160 = vector.broadcast %cst_40 : f32 to vector<8x96xf32>
    %161 = arith.addf %160, %159 : vector<8x96xf32>
    %162 = arith.divf %160, %161 : vector<8x96xf32>
    %163 = vector.extract_strided_slice %156 {offsets = [0, 96], sizes = [8, 32], strides = [1, 1]} : vector<8x128xf32> to vector<8x32xf32>
    %164 = math.tanh %163 : vector<8x32xf32>
    %165 = vector.extract_strided_slice %162 {offsets = [0, 32], sizes = [8, 32], strides = [1, 1]} : vector<8x96xf32> to vector<8x32xf32>
    %166 = arith.mulf %165, %130 : vector<8x32xf32>
    %167 = vector.extract_strided_slice %162 {offsets = [0, 0], sizes = [8, 32], strides = [1, 1]} : vector<8x96xf32> to vector<8x32xf32>
    %168 = arith.mulf %167, %164 : vector<8x32xf32>
    %169 = arith.addf %166, %168 : vector<8x32xf32>
    %170 = vector.extract_strided_slice %162 {offsets = [0, 64], sizes = [8, 32], strides = [1, 1]} : vector<8x96xf32> to vector<8x32xf32>
    %171 = math.tanh %169 : vector<8x32xf32>
    %172 = arith.mulf %170, %171 : vector<8x32xf32>
    %cst_41 = arith.constant dense<0.000000e+00> : vector<8x128xf32>
    %173 = tpu.matmul %172, %14, %cst_41 {dimension_numbers = #tpu.dot_dimension_numbers<[1], [0], [0], [1], [0, 0, 1, 1], [], []>} : vector<8x32xf32>, vector<32x128xf32>, vector<8x128xf32> -> vector<8x128xf32>
    %174 = arith.addf %173, %2 : vector<8x128xf32>
    %c0_42 = arith.constant 0 : index
    %c0_43 = arith.constant 0 : index
    %175 = vector.load %arg18[%c0_42, %c0_43] : memref<8x32xf32, #tpu.memory_space<vmem>>, vector<8x32xf32>
    tpu.vector_store %arg18[%c0_42, %c0_43], %154 {strides = array<i32>} : memref<8x32xf32, #tpu.memory_space<vmem>>, vector<8x32xf32>,
    %c0_44 = arith.constant 0 : index
    %c0_45 = arith.constant 0 : index
    %176 = vector.load %arg19[%c0_44, %c0_45] : memref<8x32xf32, #tpu.memory_space<vmem>>, vector<8x32xf32>
    tpu.vector_store %arg19[%c0_44, %c0_45], %151 {strides = array<i32>} : memref<8x32xf32, #tpu.memory_space<vmem>>, vector<8x32xf32>,
    %c0_46 = arith.constant 0 : index
    %c0_47 = arith.constant 0 : index
    %177 = vector.load %arg20[%c0_46, %c0_47] : memref<8x32xf32, #tpu.memory_space<vmem>>, vector<8x32xf32>
    tpu.vector_store %arg20[%c0_46, %c0_47], %172 {strides = array<i32>} : memref<8x32xf32, #tpu.memory_space<vmem>>, vector<8x32xf32>,
    %c0_48 = arith.constant 0 : index
    %c0_49 = arith.constant 0 : index
    %178 = vector.load %arg21[%c0_48, %c0_49] : memref<8x32xf32, #tpu.memory_space<vmem>>, vector<8x32xf32>
    tpu.vector_store %arg21[%c0_48, %c0_49], %169 {strides = array<i32>} : memref<8x32xf32, #tpu.memory_space<vmem>>, vector<8x32xf32>,
    %c0_50 = arith.constant 0 : index
    %c0_51 = arith.constant 0 : index
    %179 = vector.load %arg22[%c0_50, %c0_51] : memref<8x128xf32, #tpu.memory_space<vmem>>, vector<8x128xf32>
    tpu.vector_store %arg22[%c0_50, %c0_51], %174 {strides = array<i32>} : memref<8x128xf32, #tpu.memory_space<vmem>>, vector<8x128xf32>,
    %c1_i32 = arith.constant 1 : i32
    %180 = arith.cmpi eq, %arg0, %c1_i32 : i32
    %181 = arith.extui %180 : i1 to i32
    %c0_i32_52 = arith.constant 0 : i32
    %182 = arith.cmpi ne, %181, %c0_i32_52 : i32
    scf.if %182 {
      %c0_53 = arith.constant 0 : index
      %c0_54 = arith.constant 0 : index
      %183 = vector.load %arg9[%c0_53, %c0_54] : memref<32x128xf32, #tpu.memory_space<vmem>>, vector<32x128xf32>
      %cst_55 = arith.constant dense<0.000000e+00> : vector<8x128xf32>
      %184 = tpu.matmul %172, %183, %cst_55 {dimension_numbers = #tpu.dot_dimension_numbers<[1], [0], [0], [1], [0, 0, 1, 1], [], []>} : vector<8x32xf32>, vector<32x128xf32>, vector<8x128xf32> -> vector<8x128xf32>
      %c0_56 = arith.constant 0 : index
      %c0_57 = arith.constant 0 : index
      %185 = vector.load %arg2[%c0_56, %c0_57] : memref<8x32xf32, #tpu.memory_space<vmem>>, vector<8x32xf32>
      %c0_58 = arith.constant 0 : index
      %c0_59 = arith.constant 0 : index
      %186 = vector.load %arg10[%c0_58, %c0_59] : memref<32x128xf32, #tpu.memory_space<vmem>>, vector<32x128xf32>
      %cst_60 = arith.constant dense<0.000000e+00> : vector<8x128xf32>
      %187 = tpu.matmul %185, %186, %cst_60 {dimension_numbers = #tpu.dot_dimension_numbers<[1], [0], [0], [1], [0, 0, 1, 1], [], []>} : vector<8x32xf32>, vector<32x128xf32>, vector<8x128xf32> -> vector<8x128xf32>
      %188 = arith.addf %184, %187 : vector<8x128xf32>
      %c0_61 = arith.constant 0 : index
      %c0_62 = arith.constant 0 : index
      %189 = vector.load %arg11[%c0_61, %c0_62] : memref<1x128xf32, #tpu.memory_space<vmem>>, vector<1x128xf32>
      %190 = vector.broadcast %189 : vector<1x128xf32> to vector<8x128xf32>
      %191 = arith.addf %188, %190 : vector<8x128xf32>
      %cst_63 = arith.constant 0.000000e+00 : f32
      %192 = vector.broadcast %cst_63 : f32 to vector<8x128xf32>
      %193 = arith.cmpf oge, %191, %192 : vector<8x128xf32>
      %cst_64 = arith.constant 0.00999999977 : f32
      %194 = vector.broadcast %cst_64 : f32 to vector<8x128xf32>
      %195 = arith.mulf %194, %191 : vector<8x128xf32>
      %196 = arith.select %193, %191, %195 : vector<8x128xi1>, vector<8x128xf32>
      %c0_65 = arith.constant 0 : index
      %c0_66 = arith.constant 0 : index
      %197 = vector.load %arg12[%c0_65, %c0_66] : memref<128x128xf32, #tpu.memory_space<vmem>>, vector<128x128xf32>
      %cst_67 = arith.constant dense<0.000000e+00> : vector<8x128xf32>
      %198 = tpu.matmul %196, %197, %cst_67 {dimension_numbers = #tpu.dot_dimension_numbers<[1], [0], [0], [1], [0, 0, 1, 1], [], []>} : vector<8x128xf32>, vector<128x128xf32>, vector<8x128xf32> -> vector<8x128xf32>
      %c0_68 = arith.constant 0 : index
      %c0_69 = arith.constant 0 : index
      %199 = vector.load %arg13[%c0_68, %c0_69] : memref<1x128xf32, #tpu.memory_space<vmem>>, vector<1x128xf32>
      %200 = vector.broadcast %199 : vector<1x128xf32> to vector<8x128xf32>
      %201 = arith.addf %198, %200 : vector<8x128xf32>
      %c0_70 = arith.constant 0 : index
      %c0_71 = arith.constant 0 : index
      %202 = vector.load %arg14[%c0_70, %c0_71] : memref<128x128xf32, #tpu.memory_space<vmem>>, vector<128x128xf32>
      %cst_72 = arith.constant dense<0.000000e+00> : vector<8x128xf32>
      %203 = tpu.matmul %201, %202, %cst_72 {dimension_numbers = #tpu.dot_dimension_numbers<[1], [0], [0], [1], [0, 0, 1, 1], [], []>} : vector<8x128xf32>, vector<128x128xf32>, vector<8x128xf32> -> vector<8x128xf32>
      %c0_73 = arith.constant 0 : index
      %c0_74 = arith.constant 0 : index
      %204 = vector.load %arg15[%c0_73, %c0_74] : memref<128x128xf32, #tpu.memory_space<vmem>>, vector<128x128xf32>
      %cst_75 = arith.constant dense<0.000000e+00> : vector<8x128xf32>
      %205 = tpu.matmul %201, %204, %cst_75 {dimension_numbers = #tpu.dot_dimension_numbers<[1], [0], [0], [1], [0, 0, 1, 1], [], []>} : vector<8x128xf32>, vector<128x128xf32>, vector<8x128xf32> -> vector<8x128xf32>
      %206 = arith.maximumf %203, %205 : vector<8x128xf32>
      %207 = arith.maximumf %201, %206 : vector<8x128xf32>
      %208 = arith.subf %201, %207 : vector<8x128xf32>
      %209 = math.exp %208 : vector<8x128xf32>
      %c0_76 = arith.constant 0 : index
      %c0_77 = arith.constant 0 : index
      %210 = vector.load %arg16[%c0_76, %c0_77] : memref<128x128xf32, #tpu.memory_space<vmem>>, vector<128x128xf32>
      %cst_78 = arith.constant dense<0.000000e+00> : vector<8x128xf32>
      %211 = tpu.matmul %209, %210, %cst_78 {dimension_numbers = #tpu.dot_dimension_numbers<[1], [0], [0], [1], [0, 0, 1, 1], [], []>} : vector<8x128xf32>, vector<128x128xf32>, vector<8x128xf32> -> vector<8x128xf32>
      %212 = arith.subf %201, %207 : vector<8x128xf32>
      %213 = math.log %211 : vector<8x128xf32>
      %214 = arith.subf %212, %213 : vector<8x128xf32>
      %c0_79 = arith.constant 0 : index
      %c0_80 = arith.constant 0 : index
      %215 = vector.load %arg17[%c0_79, %c0_80] : memref<8x128xf32, #tpu.memory_space<vmem>>, vector<8x128xf32>
      tpu.vector_store %arg17[%c0_79, %c0_80], %214 {strides = array<i32>} : memref<8x128xf32, #tpu.memory_space<vmem>>, vector<8x128xf32>,
    } else {
    }
    return
  }
  func.func @transform_0(%arg0: i32) -> (i32, i32) {
    %c0_i32 = arith.constant 0 : i32
    %c0_i32_0 = arith.constant 0 : i32
    return %arg0, %c0_i32 : i32, i32
  }
  func.func @transform_1(%arg0: i32) -> (i32, i32) {
    %c0_i32 = arith.constant 0 : i32
    %c0_i32_0 = arith.constant 0 : i32
    %c0_i32_1 = arith.constant 0 : i32
    return %c0_i32, %c0_i32_0 : i32, i32
  }
  func.func @transform_2(%arg0: i32) -> (i32, i32) {
    %c0_i32 = arith.constant 0 : i32
    %c0_i32_0 = arith.constant 0 : i32
    %c0_i32_1 = arith.constant 0 : i32
    return %c0_i32, %c0_i32_0 : i32, i32
  }
  func.func @transform_3(%arg0: i32) -> (i32, i32) {
    %c0_i32 = arith.constant 0 : i32
    %c0_i32_0 = arith.constant 0 : i32
    %c0_i32_1 = arith.constant 0 : i32
    return %c0_i32, %c0_i32_0 : i32, i32
  }
  func.func @transform_4(%arg0: i32) -> (i32, i32) {
    %c0_i32 = arith.constant 0 : i32
    %c0_i32_0 = arith.constant 0 : i32
    %c0_i32_1 = arith.constant 0 : i32
    return %c0_i32, %c0_i32_0 : i32, i32
  }
  func.func @transform_5(%arg0: i32) -> (i32, i32) {
    %c0_i32 = arith.constant 0 : i32
    %c0_i32_0 = arith.constant 0 : i32
    %c0_i32_1 = arith.constant 0 : i32
    return %c0_i32, %c0_i32_0 : i32, i32
  }
  func.func @transform_6(%arg0: i32) -> (i32, i32) {
    %c0_i32 = arith.constant 0 : i32
    %c0_i32_0 = arith.constant 0 : i32
    %c0_i32_1 = arith.constant 0 : i32
    return %c0_i32, %c0_i32_0 : i32, i32
  }
  func.func @transform_7(%arg0: i32) -> (i32, i32) {
    %c0_i32 = arith.constant 0 : i32
    %c0_i32_0 = arith.constant 0 : i32
    %c0_i32_1 = arith.constant 0 : i32
    return %c0_i32, %c0_i32_0 : i32, i32
  }
  func.func @transform_8(%arg0: i32) -> (i32, i32) {
    %c0_i32 = arith.constant 0 : i32
    %c0_i32_0 = arith.constant 0 : i32
    %c0_i32_1 = arith.constant 0 : i32
    return %c0_i32, %c0_i32_0 : i32, i32
  }
  func.func @transform_9(%arg0: i32) -> (i32, i32) {
    %c0_i32 = arith.constant 0 : i32
    %c0_i32_0 = arith.constant 0 : i32
    %c0_i32_1 = arith.constant 0 : i32
    return %c0_i32, %c0_i32_0 : i32, i32
  }
  func.func @transform_10(%arg0: i32) -> (i32, i32) {
    %c0_i32 = arith.constant 0 : i32
    %c0_i32_0 = arith.constant 0 : i32
    %c0_i32_1 = arith.constant 0 : i32
    return %c0_i32, %c0_i32_0 : i32, i32
  }
  func.func @transform_11(%arg0: i32) -> (i32, i32) {
    %c0_i32 = arith.constant 0 : i32
    %c0_i32_0 = arith.constant 0 : i32
    %c0_i32_1 = arith.constant 0 : i32
    return %c0_i32, %c0_i32_0 : i32, i32
  }
  func.func @transform_12(%arg0: i32) -> (i32, i32) {
    %c0_i32 = arith.constant 0 : i32
    %c0_i32_0 = arith.constant 0 : i32
    %c0_i32_1 = arith.constant 0 : i32
    return %c0_i32, %c0_i32_0 : i32, i32
  }
  func.func @transform_13(%arg0: i32) -> (i32, i32) {
    %c0_i32 = arith.constant 0 : i32
    %c0_i32_0 = arith.constant 0 : i32
    %c0_i32_1 = arith.constant 0 : i32
    return %c0_i32, %c0_i32_0 : i32, i32
  }
  func.func @transform_14(%arg0: i32) -> (i32, i32) {
    %c0_i32 = arith.constant 0 : i32
    %c0_i32_0 = arith.constant 0 : i32
    %c0_i32_1 = arith.constant 0 : i32
    return %c0_i32, %c0_i32_0 : i32, i32
  }
  func.func @transform_15(%arg0: i32) -> (i32, i32) {
    %c0_i32 = arith.constant 0 : i32
    %c0_i32_0 = arith.constant 0 : i32
    %c0_i32_1 = arith.constant 0 : i32
    return %c0_i32, %c0_i32_0 : i32, i32
  }
  func.func @transform_16(%arg0: i32) -> (i32, i32) {
    %c0_i32 = arith.constant 0 : i32
    %c0_i32_0 = arith.constant 0 : i32
    %c0_i32_1 = arith.constant 0 : i32
    return %c0_i32, %c0_i32_0 : i32, i32
  }
}

</mosaic_0001>

<bundles_post_ra>
// kernel: movie_lstm_forward.1
= control target key start
LH: loop header
LB: loop body
LE: loop exit
PB: predicated region body
PF: predicated region fallthrough
CT: control target
= control target key end

     0   :  { %s4141_s0 = inlined_call_operand.vmem [shape: f32[64,16], index: 0, kind: input, shape index: {}]   ;;  %s4142_s1 = inlined_call_operand.vmem [shape: f32[8,32], index: 1, kind: input, shape index: {}]   ;;  %s4143_s2 = inlined_call_operand.hbm [shape: f32[16,128], index: 2, kind: input, shape index: {}]   ;;  %s4144_s3 = inlined_call_operand.vmem [shape: f32[1,128], index: 3, kind: input, shape index: {}]   ;;  %s4145_s4 = inlined_call_operand.vmem [shape: f32[32,128], index: 4, kind: input, shape index: {}]   ;;  %s4146_s5 = inlined_call_operand.vmem [shape: f32[32,128], index: 5, kind: input, shape index: {}]   ;;  %s4147_s6 = inlined_call_operand.vmem [shape: f32[32,128], index: 6, kind: input, shape index: {}]   ;;  %s4148_s7 = inlined_call_operand.vmem [shape: f32[1,128], index: 7, kind: input, shape index: {}]   ;;  %s4149_s8 = inlined_call_operand.hbm [shape: f32[32,128], index: 8, kind: input, shape index: {}]   ;;  %s4150_s9 = inlined_call_operand.hbm [shape: f32[32,128], index: 9, kind: input, shape index: {}]   ;;  %s4151_s10 = inlined_call_operand.vmem [shape: f32[1,128], index: 10, kind: input, shape index: {}]   ;;  %s4152_s11 = inlined_call_operand.vmem [shape: f32[128,128], index: 11, kind: input, shape index: {}]   ;;  %s4153_s12 = inlined_call_operand.vmem [shape: f32[1,128], index: 12, kind: input, shape index: {}]   ;;  %s4154_s13 = inlined_call_operand.hbm [shape: f32[128,128], index: 13, kind: input, shape index: {}]   ;;  %s4155_s14 = inlined_call_operand.hbm [shape: f32[128,128], index: 14, kind: input, shape index: {}]   ;;  %s4156_s15 = inlined_call_operand.hbm [shape: f32[128,128], index: 15, kind: input, shape index: {}]   ;;  %s4157_s16 = inlined_call_operand.vmem [shape: f32[8,128], index: 16, kind: output, shape index: {}]  }
   0x1   :  { %4161 = sst [smem:[#allocation22_spill]] %s4141_s0 }
   0x2   :  { %4162 = sst [smem:[#allocation23_spill]] %s4142_s1 }
   0x3   :  { %4163 = sst [smem:[#allocation24_spill]] %s4151_s10 }
   0x4   :  { %4164 = sst [smem:[#allocation25_spill]] %s4153_s12 }
   0x5   :  { %4165 = sst [smem:[#allocation26_spill]] %s4157_s16 }
   0x6   :  { %21 = vsyncpa [#allocation8], 0 }
   0x7   :  { %22 = vsyncpa [#allocation10], 0 }
   0x8   :  { %23 = vsyncpa [#allocation13], 0 }
   0x9   :  { %24 = vsyncpa [#allocation16], 0  ;;  %s3596_s21 = smov 0  }
   0xa LB: > { %4166 = sst [smem:[#allocation21_spill]] %s3491_s21  ;;  %s3602_s22 = sadd.s32 4294967295, %s3491_s21   ;;  %s3491_s21 = sphi %s3596_s21, %s30_s21  }
   0xb   : > { %p2460_p0 = scmp.ge.s32.totalorder %s3491_s21, 1  ;;  %p397_p1 = scmp.lt.s32.totalorder %s3491_s21, 3 }
   0xc   : > { %p4159_p3 = scmp.eq.s32.totalorder %s3602_s22, 0  ;;  %s3493_s24 = smov [#allocation9]  }
   0xd   : > { %p3608_p4 = pnand %p2460_p0, %p397_p1  ;;  %s440_s25 = sshll.u32 %s3493_s24, 4  ;;  %s3612_s25 = int_to_ptr.vmem [resolvable:$true] %s440_s25 }
   0xe   : > { %s3494_s26 = smov [#allocation12]   ;;  %s3495_s29 = smov [#allocation7]  }
   0xf   : > { %s4167_s23 = scalar_select %p3608_p4, 1, 0 }
  0x10   : > { %p3176_p5 = pneg %p3608_p4  ;;  %s475_s27 = sshll.u32 %s3494_s26, 4  ;;  %s3616_s27 = int_to_ptr.vmem [resolvable:$true] %s475_s27 }
  0x11   : > { %s412_s30 = sshll.u32 %s3495_s29, 4  ;;  %s3496_s0 = smov [#allocation11]   ;;  %s3624_s30 = int_to_ptr.vmem [resolvable:$true] %s412_s30 }
  0x12   : > { %p3620_p6 = pnand %p4159_p3, %p3176_p5  ;;  %s3626_s17 = sshll.u32 %s3496_s0, 4  ;;  %s454_s17 = int_to_ptr.vmem [resolvable:$true] %s3626_s17 }
  0x13   : > { %s3301_s20 = scalar_lea.hbm %s4149_s8, 512 }
  0x14   : > { %p3302_p7 = scmp.ne.s32.totalorder %s4149_s8, %s3301_s20  ;;  %p3636_p8 = pneg %p3620_p6 }
  0x15   : > { %p3308_p11 = scmp.lt.u32.totalorder %s3301_s20, %s4149_s8 }
  0x16   : > { %p3304_p9 = pnand %p3636_p8, %p3302_p7 }
  0x18   : > { %p3305_p10 = pneg %p3304_p9 }
  0x1a   : > { %p3310_p12 = pnand %p3308_p11, %p3305_p10 }
  0x1c   : > { %3313 = shalt.err (!%p3310_p12)
}
  0x1d   : > { %s3314_s18 = scalar_lea.vmem %s3612_s25, 512  ;;  %p3322_p5 = scmp.lt.s32.totalorder %s3612_s25, %s3612_s25 }
  0x1e   : > { %p3315_p13 = scmp.ne.s32.totalorder %s3612_s25, %s3314_s18  ;;  %p3323_p2 = scmp.lt.s32.totalorder %s3314_s18, %s3314_s18 }
  0x20   : > { %p3317_p0 = pnand %p3315_p13, %p3636_p8  ;;  %p3324_p7 = por %p3323_p2, %p3322_p5 }
  0x22   : > { %p3318_p1 = pneg %p3317_p0 }
  0x24   : > { %p3325_p9 = pnand %p3324_p7, %p3318_p1 }
  0x26   : > { %3328 = shalt.err (!%p3325_p9)
}
  0x27   : > { %s3497_s19 = smov 128   ;;  %s3498_s20 = smov 8  }
  0x28   : > { %3182 = dma.hbm_to_vmem [thread:$0]  (!%p3620_p6), %s4149_s8, 512, %s3612_s25, [#allocation10], %s3497_s19, %s3497_s19, %s3498_s20  }
  0x29   : > { %s3329_s18 = scalar_lea.hbm %s4154_s13, 2048 }
  0x2a   : > { %p3330_p2 = scmp.ne.s32.totalorder %s4154_s13, %s3329_s18  ;;  %p3336_p12 = scmp.lt.u32.totalorder %s3329_s18, %s4154_s13 }
  0x2c   : > { %p3332_p10 = pnand %p3330_p2, %p3636_p8 }
  0x2e   : > { %p3333_p11 = pneg %p3332_p10 }
  0x30   : > { %p3338_p13 = pnand %p3336_p12, %p3333_p11 }
  0x32   : > { %3341 = shalt.err (!%p3338_p13)
}
  0x33   : > { %s3342_s25 = scalar_lea.vmem %s3616_s27, 2048  ;;  %p3350_p7 = scmp.lt.s32.totalorder %s3616_s27, %s3616_s27 }
  0x34   : > { %p3343_p0 = scmp.ne.s32.totalorder %s3616_s27, %s3342_s25  ;;  %p3351_p9 = scmp.lt.s32.totalorder %s3342_s25, %s3342_s25 }
  0x36   : > { %p3345_p1 = pnand %p3343_p0, %p3636_p8  ;;  %p3352_p2 = por %p3351_p9, %p3350_p7 }
  0x38   : > { %p3346_p5 = pneg %p3345_p1 }
  0x3a   : > { %p3353_p10 = pnand %p3352_p2, %p3346_p5 }
  0x3c   : > { %3356 = shalt.err (!%p3353_p10)
}
  0x3d   : > { %3188 = dma.hbm_to_vmem [thread:$0]  (!%p3620_p6), %s4154_s13, 2048, %s3616_s27, [#allocation13], %s3497_s19, %s3497_s19, %s3498_s20  }
  0x3e   : > { %s3357_s24 = scalar_lea.hbm %s4143_s2, 256 }
  0x3f   : > { %p3358_p11 = scmp.ne.s32.totalorder %s4143_s2, %s3357_s24  ;;  %p3364_p0 = scmp.lt.u32.totalorder %s3357_s24, %s4143_s2 }
  0x41   : > { %p3360_p12 = pnand %p3358_p11, %p3636_p8 }
  0x43   : > { %p3361_p13 = pneg %p3360_p12 }
  0x45   : > { %p3366_p1 = pnand %p3364_p0, %p3361_p13 }
  0x47   : > { %3369 = shalt.err (!%p3366_p1)
}
  0x48   : > { %s3370_s27 = scalar_lea.vmem %s3624_s30, 256  ;;  %p3378_p2 = scmp.lt.s32.totalorder %s3624_s30, %s3624_s30 }
  0x49   : > { %p3371_p5 = scmp.ne.s32.totalorder %s3624_s30, %s3370_s27  ;;  %p3379_p10 = scmp.lt.s32.totalorder %s3370_s27, %s3370_s27 }
  0x4b   : > { %p3373_p7 = pnand %p3371_p5, %p3636_p8  ;;  %p3380_p11 = por %p3379_p10, %p3378_p2 }
  0x4d   : > { %p3374_p9 = pneg %p3373_p7 }
  0x4f   : > { %p3381_p12 = pnand %p3380_p11, %p3374_p9 }
  0x51   : > { %3384 = shalt.err (!%p3381_p12)
}
  0x52   : > { %3179 = dma.hbm_to_vmem [thread:$0]  (!%p3620_p6), %s4143_s2, 256, %s3624_s30, [#allocation8], %s3497_s19, %s3497_s19, %s3498_s20  }
  0x53   : > { %s3385_s16 = scalar_lea.hbm %s4150_s9, 512 }
  0x54   : > { %p3386_p13 = scmp.ne.s32.totalorder %s4150_s9, %s3385_s16  ;;  %p3392_p5 = scmp.lt.u32.totalorder %s3385_s16, %s4150_s9 }
  0x56   : > { %p3388_p0 = pnand %p3386_p13, %p3636_p8 }
  0x58   : > { %p3389_p1 = pneg %p3388_p0 }
  0x5a   : > { %p3394_p7 = pnand %p3392_p5, %p3389_p1 }
  0x5c   : > { %3397 = shalt.err (!%p3394_p7)
}
  0x5d   : > { %s3398_s18 = scalar_lea.vmem %s454_s17, 512  ;;  %p3406_p11 = scmp.lt.s32.totalorder %s454_s17, %s454_s17 }
  0x5e   : > { %p3399_p9 = scmp.ne.s32.totalorder %s454_s17, %s3398_s18  ;;  %p3407_p12 = scmp.lt.s32.totalorder %s3398_s18, %s3398_s18 }
  0x60   : > { %p3401_p2 = pnand %p3399_p9, %p3636_p8  ;;  %p3408_p3 = por %p3407_p12, %p3406_p11 }
  0x62   : > { %p3402_p10 = pneg %p3401_p2 }
  0x64   : > { %p3409_p4 = pnand %p3408_p3, %p3402_p10 }
  0x66   : > { %3412 = shalt.err (!%p3409_p4)
}
  0x67   : > { %3185 = dma.hbm_to_vmem [thread:$0]  (!%p3620_p6), %s4150_s9, 512, %s454_s17, [#allocation10], %s3497_s19, %s3497_s19, %s3498_s20  }
  0x68   : > { %s3499_s25 = smov [#allocation14]   ;;  %s3500_s10 = smov [#allocation15]  }
  0x69   : > { %s488_s1 = sshll.u32 %s3499_s25, 4  ;;  %s501_s12 = sshll.u32 %s3500_s10, 4  ;;  %s489_s1 = int_to_ptr.vmem [resolvable:$true] %s488_s1  ;;  %s502_s12 = int_to_ptr.vmem [resolvable:$true] %s501_s12 }
  0x6a   : > { %s3413_s26 = scalar_lea.hbm %s4155_s14, 2048 }
  0x6b   : > { %p3414_p3 = scmp.ne.s32.totalorder %s4155_s14, %s3413_s26  ;;  %p3420_p0 = scmp.lt.u32.totalorder %s3413_s26, %s4155_s14 }
  0x6d   : > { %p3416_p4 = pnand %p3414_p3, %p3636_p8 }
  0x6f   : > { %p3417_p13 = pneg %p3416_p4 }
  0x71   : > { %p3422_p1 = pnand %p3420_p0, %p3417_p13 }
  0x73   : > { %3425 = shalt.err (!%p3422_p1)
}
  0x74   : > { %s3426_s17 = scalar_lea.vmem %s489_s1, 2048  ;;  %p3434_p2 = scmp.lt.s32.totalorder %s489_s1, %s489_s1 }
  0x75   : > { %p3427_p5 = scmp.ne.s32.totalorder %s489_s1, %s3426_s17  ;;  %p3435_p10 = scmp.lt.s32.totalorder %s3426_s17, %s3426_s17 }
  0x77   : > { %p3429_p7 = pnand %p3427_p5, %p3636_p8  ;;  %p3436_p11 = por %p3435_p10, %p3434_p2 }
  0x79   : > { %p3430_p9 = pneg %p3429_p7 }
  0x7b   : > { %p3437_p12 = pnand %p3436_p11, %p3430_p9 }
  0x7d   : > { %3440 = shalt.err (!%p3437_p12)
}
  0x7e   : > { %3191 = dma.hbm_to_vmem [thread:$0]  (!%p3620_p6), %s4155_s14, 2048, %s489_s1, [#allocation13], %s3497_s19, %s3497_s19, %s3498_s20  }
  0x7f   : > { %s3441_s24 = scalar_lea.hbm %s4156_s15, 2048 }
  0x80   : > { %p3442_p3 = scmp.ne.s32.totalorder %s4156_s15, %s3441_s24  ;;  %p3448_p0 = scmp.lt.u32.totalorder %s3441_s24, %s4156_s15 }
  0x82   : > { %p3444_p4 = pnand %p3442_p3, %p3636_p8 }
  0x84   : > { %p3445_p13 = pneg %p3444_p4 }
  0x86   : > { %p3450_p1 = pnand %p3448_p0, %p3445_p13 }
  0x88   : > { %3453 = shalt.err (!%p3450_p1)
}
  0x89   : > { %s3454_s30 = scalar_lea.vmem %s502_s12, 2048  ;;  %p3462_p2 = scmp.lt.s32.totalorder %s502_s12, %s502_s12 }
  0x8a   : > { %p3455_p5 = scmp.ne.s32.totalorder %s502_s12, %s3454_s30  ;;  %p3463_p10 = scmp.lt.s32.totalorder %s3454_s30, %s3454_s30 }
  0x8c   : > { %p3457_p7 = pnand %p3455_p5, %p3636_p8  ;;  %p3464_p11 = por %p3463_p10, %p3462_p2 }
  0x8e   : > { %p3458_p9 = pneg %p3457_p7 }
  0x90   : > { %p3465_p12 = pnand %p3464_p11, %p3458_p9 }
  0x92   : > { %3468 = shalt.err (!%p3465_p12)
}
  0x93   : > { %3194 = dma.hbm_to_vmem [thread:$0]  (!%p3620_p6), %s4156_s15, 2048, %s502_s12, [#allocation16], %s3497_s19, %s3497_s19, %s3498_s20  }
  0x94   : > { %p4170_p3 = scmp.ne.s32.totalorder %s4167_s23, 0 }
  0x95   : > { %p4171_p8 = scmp.eq.s32.totalorder (!%p4170_p3), %s3602_s22, 0 }
  0x96   : > { %526 = sbr.rel (%p4170_p3) target bundleno = 4833 (0x12e1), region = 84 }
  0x9d   : > { %3474 = dma.done.wait (%p4171_p8), [#allocation8], 256   ;;  %p4172_p4 = pmov %p4171_p8 }
  0x9f   : > { %3476 = vsyncadd (%p4172_p4), [#allocation8], 4294967040  ;;  %p4173_p13 = pmov %p4172_p4 }
  0xa0   : > { %p4174_p0 = pmov %p4172_p4 }
  0xa1   : > { %3478 = dma.done.wait (%p4173_p13), [#allocation10], 1024  }
  0xa2   : > { %3480 = vsyncadd (%p4174_p0), [#allocation10], 4294966272  ;;  %p4175_p1 = pmov %p4174_p0 }
  0xa3   : > { %p4176_p6 = pmov %p4174_p0 }
  0xa4   : > { %3482 = dma.done.wait (%p4175_p1), [#allocation13], 4096  }
  0xa5   : > { %3484 = vsyncadd (%p4176_p6), [#allocation13], 4294963200  ;;  %p4177_p5 = pmov %p4174_p0 }
  0xa6   : > { %p4178_p7 = pmov %p4174_p0 }
  0xa7   : > { %3486 = dma.done.wait (%p4177_p5), [#allocation16], 2048  }
  0xa8   : > { %3488 = vsyncadd (%p4178_p7), [#allocation16], 4294965248  ;;  %s2475_s21 = sshll.u32 %s3602_s22, 2  ;;  %s4179_s20 = sld [smem:[#allocation22_spill]]  ;;  %v3803_v0 = vld [vmem:[%s4148_s7] ss:$0 sm:$0xff] }
  0xa9   : > { %p592_p9 = scmp.lt.s32.totalorder %s2475_s21, 7  ;;  %p4180_p2 = scmp.ne.s32.totalorder %s3602_s22, 0 }
  0xaa   : > { %vm608_vm0 = vcmask (!%p4180_p2), 261120   ;;  %613 = vst [vmem:[#allocation6] sm:$0xff] (!%p4180_p2), %v3803_v0  ;;  %v3501_v1 = vmov (!%p4180_p2), 0.0  }
  0xab   : > { %s4187_s21 = smov (!%p592_p9, %s2475_s21), 7  ;;  %607 = sbr.rel (%p4180_p2) target bundleno = 178 (0xb2), region = 112 }
  0xac   : > { %s2476_s23 = sshll.u32 %s4187_s21, 3  ;;  %609 = vst.msk [vmem:[#allocation2] sm:$0xff] (!%p4180_p2), %vm608_vm0, %v3501_v1  ;;  %610 = vst.msk [vmem:[#allocation3] sm:$0xff] (!%p4180_p2), %vm608_vm0, %v3501_v1 }
  0xad   : > { %612 = vst.msk [vmem:[#allocation5] sm:$0xff] (!%p4180_p2), %vm608_vm0, %v3501_v1 }
  0xae   : > { %s3798_s12 = scalar_lea.vmem %s4179_s20, %s2476_s23 }
  0xb2 PF: > { %v618_v2 = vld [vmem:[#allocation7] sm:$0xff]  ;;  %v619_v3 = vld [vmem:[#allocation7 + $0x8] sm:$0xff]  ;;  %vm627_vm1 = vcmask 130048   ;;  %v3502_v5 = vmov 0.0|0.0   ;;  %v727_v10 = vld [vmem:[%s4145_s4 + $0x10] sm:$0xff]  ;;  %vm3503_vm2 = vmmov 0  }
  0xb3   : > { %v725_v4 = vld [vmem:[%s4145_s4] sm:$0xff]  ;;  %2963 = vmatprep.subr.bf16.mxu1 %v3502_v5  ;;  %v2959_v6 = vpack.c.bf16 %v619_v3, %v618_v2  ;;  %v726_v7 = vld [vmem:[%s4145_s4 + $0x8] sm:$0xff]  ;;  %v728_v11 = vld [vmem:[%s4145_s4 + $0x18] sm:$0xff]  ;;  %v3504_v12 = vmov 0.0   ;;  %vm741_vm3 = vcmask 261120   ;;  %s3505_s21 = smov 32  }
  0xb4   : > { %v614_v8 = vld [vmem:[%s3798_s12] sm:$0xff]  ;;  %v3816_v9 = vpack.c.bf16 %v726_v7, %v725_v4  ;;  %2673 = vmatprep.mubr.msk.f32.mxu1 %vm3503_vm2, %v3504_v12  ;;  %v615_v13 = vld [vmem:[%s3798_s12 + $0x8] sm:$0xff]  ;;  %v3829_v14 = vpack.c.bf16 %v728_v11, %v727_v10  ;;  %v616_v37 = vld [vmem:[%s3798_s12 + $0x10] sm:$0xff]  ;;  %s3507_s23 = smov 96   ;;  %p2504_p10 = scmp.ne.s32.totalorder %s3602_s22, 1 }
  0xb5   : > { %2659 = vmatprep.mubr.msk.f32.mxu0 %vm627_vm1, %v614_v8  ;;  %2960 = vmatprep.subr.bf16.mxu0 %v2959_v6  ;;  %v737_v15 = vld [vmem:[#allocation2] sm:$0xff]  ;;  %v738_v24 = vld [vmem:[#allocation3] sm:$0xff]  ;;  %v617_v39 = vld [vmem:[%s3798_s12 + $0x18] sm:$0xff]  ;;  %s3506_s12 = smov 64   ;;  %vm3509_vm4 = vmmov (!%p2504_p10), 0   ;;  %s4181_s25 = sld [smem:[#allocation23_spill]] (!%p2504_p10) }
  0xb6   : > { %2965 = vmatpush3.bf16.msra.mxu1 %v3816_v9  ;;  %2962 = vmatpush3.bf16.msra.mxu0 %v2959_v6  ;;  %v3842_v16 = vld [vmem:[%s4144_s3] ss:$0 sm:$0xff]  ;;  %v730_v36 = vld [vmem:[%s4146_s5 + $0x8] sm:$0xff]  ;;  %v731_v40 = vld [vmem:[%s4146_s5 + $0x10] sm:$0xff]  ;;  %s4183_s28 = sld [smem:[#allocation25_spill]] (!%p2504_p10)  ;;  %s4184_s27 = sld [smem:[#allocation26_spill]] (!%p2504_p10) }
  0xb7   : > { %2966 = vmatprep.subr.bf16.mxu1 %v3502_v5  ;;  %2969 = vmatprep.subr.bf16.mxu0 %v3502_v5  ;;  %v729_v35 = vld [vmem:[%s4146_s5] sm:$0xff]  ;;  %v732_v41 = vld [vmem:[%s4146_s5 + $0x18] sm:$0xff]  ;;  %v739_v58 = vld [vmem:[#allocation5] sm:$0xff] }
  0xb8   : > { %v3860_v38 = vpack.c.bf16 %v730_v36, %v729_v35  ;;  %v3872_v42 = vpack.c.bf16 %v732_v41, %v731_v40  ;;  %v740_v49 = vld [vmem:[#allocation6] sm:$0xff] }
  0xb9   : > { %2660 = vmatmul.mubr.msk.f32.vlgmr.msra.gmra.mrb[0].mxu0 %vm627_vm1, %v615_v13 }
  0xba   : > { %2968 = vmatpush3.bf16.msra.mxu1 %v3829_v14  ;;  %2662 = vmatprep.mubr.msk.f32.mxu0 %vm627_vm1, %v616_v37 }
  0xbb   : > { %2975 = vmatprep.subr.bf16.mxu1 %v3502_v5  ;;  %2971 = vmatpush3.bf16.msra.mxu0 %v3860_v38 }
  0xbc   : > { %2972 = vmatprep.subr.bf16.mxu0 %v3502_v5 }
  0xbd   : > { %2674 = vmatmul.mubr.msk.f32.vlgmr.msra.gmra.mrb[0].mxu1 %vm741_vm3, %v737_v15  ;;  %2663 = vmatmul.mubr.msk.f32.gmra.mrb[2].mxu0 %vm627_vm1, %v617_v39 }
  0xbe   : > { %2695 = vmatprep.mubr.msk.f32.mxu1 %vm3503_vm2, %v3504_v12  ;;  %2684 = vmatprep.mubr.msk.f32.mxu0 %vm3503_vm2, %v3504_v12 }
  0xbf   : > { %2974 = vmatpush3.bf16.msra.mxu0 %v3872_v42 }
  0xc0   : > { %2981 = vmatprep.subr.bf16.mxu0 %v3502_v5 }
 0x18c   : > { %v3844_v17 = vpop.f32.mrb[0].mxu0 }
 0x18d   : > { %v706_v18 = vpop.f32.mrb[1].mxu0  ;;  %v712_v53 = vadd.f32 %v3844_v17, %v3842_v16 }
 0x18e   : > { %v707_v19 = vadd.f32 %v3842_v16, %v706_v18 }
 0x190   : > { %v811_v20 = vpop.f32.mrb[0].mxu1  ;;  %v3881_v46 = vpop.f32.mrb[2].mxu0 }
 0x191   : > { %v815_v21 = vadd.f32 %v811_v20, %v707_v19  ;;  %v2675_v22 = vpop.f32.mrb[1].mxu1  ;;  %v3883_v47 = vpop.f32.mrb[3].mxu0 }
 0x192   : > { %v734_v22 = vld [vmem:[%s4147_s6 + $0x8] sm:$0xff]  ;;  %v717_v39 = vadd.f32 %v3842_v16, %v3883_v47 }
 0x193   : > { %3233 = vtanh.f32 %v815_v21  ;;  %v2485_v25 = vmul.f32 -1.442695, %v815_v21  ;;  %v733_v21 = vld [vmem:[%s4147_s6] sm:$0xff] }
 0x195   : > { %3235 = vpow2.f32 %v2485_v25  ;;  %v736_v25 = vld [vmem:[%s4147_s6 + $0x18] sm:$0xff] }
 0x19d   : > { %v3234_v23 = vpop.eup %3233 }
 0x19e   : > { %829 = vrot.lane.b32.xlu0 %v3234_v23, %s3505_s21  ;;  %v735_v23 = vld [vmem:[%s4147_s6 + $0x10] sm:$0xff] }
 0x19f   : > { %v3236_v26 = vpop.eup %3235 }
 0x1a0   : > { %v819_v27 = vadd.f32 1.0, %v3236_v26 }
 0x1a2   : > { %824 = vrot.lane.b32.xlu0 %v738_v24, %s3505_s21  ;;  %3237 = vrcp.f32 %v819_v27  ;;  %v3918_v24 = vpack.c.bf16 %v734_v22, %v733_v21  ;;  %v3925_v27 = vpack.c.bf16 %v736_v25, %v735_v23 }
 0x1a4   : > { %2977 = vmatpush3.bf16.msra.mxu1 %v3918_v24 }
 0x1a5   : > { %2978 = vmatprep.subr.bf16.mxu1 %v3502_v5 }
 0x1a8   : > { %2980 = vmatpush3.bf16.msra.mxu1 %v3925_v27 }
 0x1a9   : > { %2987 = vmatprep.subr.bf16.mxu1 %v3502_v5 }
 0x1ac   : > { %v3238_v28 = vpop.eup %3237 }
 0x210   : > { %v830_v29 = vpop.permute.xlu0 %829 }
 0x211   : > { %v832_v30 = vmul.f32 %v3238_v28, %v830_v29 }
 0x213   : > { %834 = vrot.lane.b32.xlu1 %v832_v30, %s3505_s21 }
 0x214   : > { %v825_v31 = vpop.permute.xlu0 %824 }
 0x215   : > { %v827_v32 = vmul.f32 %v3238_v28, %v825_v31 }
 0x285   : > { %v835_v33 = vpop.permute.xlu1 %834 }
 0x286   : > { %v3850_v34 = vadd.f32 %v835_v33, %v827_v32 }
 0x288   : > { %3239 = vtanh.f32 %v3850_v34 }
 0x292   : > { %v3240_v43 = vpop.eup %3239 }
 0x293   : > { %840 = vrot.lane.b32.xlu1 %v3240_v43, %s3505_s21 }
 0x305   : > { %v841_v44 = vpop.permute.xlu1 %840 }
 0x306   : > { %v843_v45 = vmul.f32 %v3238_v28, %v841_v44 }
 0x308   : > { %845 = vrot.lane.b32.xlu0 %v843_v45, %s3506_s12 }
 0x37a   : > { %v846_v48 = vpop.permute.xlu0 %845 }
 0x37b   : > { %2685 = vmatmul.mubr.msk.f32.vlgmr.msra.gmra.mrb[4].mxu0 %vm741_vm3, %v846_v48 }
 0x37c   : > { %2983 = vmatpush3.bf16.msra.mxu0 %v3816_v9  ;;  %2706 = vmatprep.mubr.msk.f32.mxu0 %vm3503_vm2, %v3504_v12 }
 0x37d   : > { %2984 = vmatprep.subr.bf16.mxu0 %v3502_v5 }
 0x380   : > { %2986 = vmatpush3.bf16.msra.mxu0 %v3829_v14 }
 0x381   : > { %2993 = vmatprep.subr.bf16.mxu0 %v3502_v5 }
 0x383   : > { %2707 = vmatmul.mubr.msk.f32.vlgmr.msra.gmra.mrb[6].mxu0 %vm741_vm3, %v846_v48 }
 0x384   : > { %2728 = vmatprep.mubr.msk.f32.mxu0 %vm3503_vm2, %v3504_v12  ;;  %2995 = vmatpush3.bf16.msra.mxu0 %v3918_v24 }
 0x385   : > { %2996 = vmatprep.subr.bf16.mxu0 %v3502_v5 }
 0x388   : > { %2998 = vmatpush3.bf16.msra.mxu0 %v3925_v27 }
 0x389   : > { %3005 = vmatprep.subr.bf16.mxu0 %v3502_v5 }
 0x44e   : > { %v915_v50 = vpop.f32.mrb[4].mxu0 }
 0x44f   : > { %v916_v51 = vadd.f32 %v915_v50, %v740_v49  ;;  %v2686_v52 = vpop.f32.mrb[5].mxu0 }
 0x451   : > { %3241 = vtanh.f32 %v916_v51  ;;  %v2487_v60 = vmul.f32 -1.442695, %v916_v51 }
 0x456   : > { %v1088_v54 = vpop.f32.mrb[6].mxu0 }
 0x457   : > { %v1092_v55 = vadd.f32 %v1088_v54, %v712_v53  ;;  %v2708_v56 = vpop.f32.mrb[7].mxu0 }
 0x459   : > { %3243 = vtanh.f32 %v1092_v55  ;;  %v2490_v61 = vmul.f32 -1.442695, %v1092_v55 }
 0x45a   : > { %3245 = vpow2.f32 %v2487_v60 }
 0x45b   : > { %v3242_v57 = vpop.eup %3241  ;;  %3247 = vpow2.f32 %v2490_v61 }
 0x45c   : > { %932 = vrot.lane.b32.xlu1 %v3242_v57, %s3505_s21 }
 0x460   : > { %927 = vrot.lane.b32.xlu1 %v739_v58, %s3505_s21 }
 0x463   : > { %v3244_v59 = vpop.eup %3243 }
 0x464   : > { %1102 = vrot.lane.b32.xlu0 %v3244_v59, %s3505_s21  ;;  %v3246_v62 = vpop.eup %3245 }
 0x465   : > { %v922_v63 = vadd.f32 1.0, %v3246_v62  ;;  %v3248_v1 = vpop.eup %3247 }
 0x466   : > { %v1096_v2 = vadd.f32 1.0, %v3248_v1 }
 0x467   : > { %3249 = vrcp.f32 %v922_v63 }
 0x468   : > { %3251 = vrcp.f32 %v1096_v2 }
 0x471   : > { %v3250_v3 = vpop.eup %3249 }
 0x472   : > { %v3252_v7 = vpop.eup %3251 }
 0x473   : > { %v1100_v18 = vmul.f32 %v3252_v7, %v3850_v34 }
 0x4ce   : > { %v933_v4 = vpop.permute.xlu1 %932 }
 0x4cf   : > { %v935_v6 = vmul.f32 %v3250_v3, %v933_v4 }
 0x4d1   : > { %937 = vrot.lane.b32.xlu0 %v935_v6, %s3505_s21 }
 0x4d2   : > { %v928_v11 = vpop.permute.xlu1 %927 }
 0x4d3   : > { %v930_v13 = vmul.f32 %v3250_v3, %v928_v11 }
 0x4d6   : > { %v1103_v8 = vpop.permute.xlu0 %1102 }
 0x4d7   : > { %v1105_v10 = vmul.f32 %v3252_v7, %v1103_v8 }
 0x4d9   : > { %1107 = vrot.lane.b32.xlu1 %v1105_v10, %s3505_s21 }
 0x543   : > { %v938_v15 = vpop.permute.xlu0 %937 }
 0x544   : > { %v3902_v17 = vadd.f32 %v938_v15, %v930_v13 }
 0x546   : > { %3253 = vtanh.f32 %v3902_v17 }
 0x54b   : > { %v1108_v19 = vpop.permute.xlu1 %1107 }
 0x54c   : > { %v3906_v20 = vadd.f32 %v1108_v19, %v1100_v18 }
 0x54e   : > { %3255 = vtanh.f32 %v3906_v20 }
 0x550   : > { %v3254_v26 = vpop.eup %3253 }
 0x551   : > { %943 = vrot.lane.b32.xlu0 %v3254_v26, %s3505_s21 }
 0x558   : > { %v3256_v28 = vpop.eup %3255 }
 0x559   : > { %1113 = vrot.lane.b32.xlu1 %v3256_v28, %s3505_s21 }
 0x5c3   : > { %v944_v29 = vpop.permute.xlu0 %943 }
 0x5c4   : > { %v946_v30 = vmul.f32 %v3250_v3, %v944_v29 }
 0x5c6   : > { %948 = vrot.lane.b32.xlu0 %v946_v30, %s3506_s12 }
 0x5cb   : > { %v1114_v31 = vpop.permute.xlu1 %1113 }
 0x5cc   : > { %v1116_v32 = vmul.f32 %v3252_v7, %v1114_v31 }
 0x5ce   : > { %1118 = vrot.lane.b32.xlu1 %v1116_v32, %s3506_s12 }
 0x638   : > { %v949_v33 = vpop.permute.xlu0 %948 }
 0x639   : > { %2696 = vmatmul.mubr.msk.f32.vlgmr.msra.gmra.mrb[2].mxu1 %vm741_vm3, %v949_v33 }
 0x63a   : > { %2989 = vmatpush3.bf16.msra.mxu1 %v3860_v38  ;;  %2717 = vmatprep.mubr.msk.f32.mxu1 %vm3503_vm2, %v3504_v12 }
 0x63b   : > { %2990 = vmatprep.subr.bf16.mxu1 %v3502_v5 }
 0x63e   : > { %2992 = vmatpush3.bf16.msra.mxu1 %v3872_v42 }
 0x63f   : > { %2999 = vmatprep.subr.bf16.mxu1 %v3502_v5 }
 0x640   : > { %v1119_v34 = vpop.permute.xlu1 %1118 }
 0x641   : > { %2718 = vmatmul.mubr.msk.f32.vlgmr.msra.gmra.mrb[2].mxu1 %vm741_vm3, %v1119_v34 }
 0x642   : > { %3001 = vmatpush3.bf16.msra.mxu1 %v3816_v9  ;;  %2739 = vmatprep.mubr.msk.f32.mxu1 %vm3503_vm2, %v3504_v12 }
 0x643   : > { %3002 = vmatprep.subr.bf16.mxu1 %v3502_v5 }
 0x646   : > { %3004 = vmatpush3.bf16.msra.mxu1 %v3829_v14 }
 0x647   : > { %3011 = vmatprep.subr.bf16.mxu1 %v3502_v5 }
 0x649   : > { %2740 = vmatmul.mubr.msk.f32.vlgmr.msra.gmra.mrb[4].mxu1 %vm741_vm3, %v1119_v34 }
 0x64a   : > { %3013 = vmatpush3.bf16.msra.mxu1 %v3918_v24  ;;  %2761 = vmatprep.mubr.msk.f32.mxu1 %vm3503_vm2, %v3504_v12 }
 0x64b   : > { %3014 = vmatprep.subr.bf16.mxu1 %v3502_v5 }
 0x64e   : > { %3016 = vmatpush3.bf16.msra.mxu1 %v3925_v27 }
 0x64f   : > { %3023 = vmatprep.subr.bf16.mxu1 %v3502_v5 }
 0x714   : > { %v1188_v35 = vpop.f32.mrb[2].mxu1 }
 0x715   : > { %v3143_v36 = vadd.f32 %v3803_v0, %v1188_v35  ;;  %v2719_v37 = vpop.f32.mrb[3].mxu1 }
 0x717   : > { %3257 = vtanh.f32 %v3143_v36  ;;  %v2492_v48 = vmul.f32 -1.442695, %v3143_v36 }
 0x71c   : > { %v1357_v40 = vpop.f32.mrb[4].mxu1 }
 0x71d   : > { %v1361_v41 = vadd.f32 %v1357_v40, %v717_v39  ;;  %v2741_v43 = vpop.f32.mrb[5].mxu1 }
 0x71f   : > { %3259 = vtanh.f32 %v1361_v41  ;;  %v2495_v49 = vmul.f32 -1.442695, %v1361_v41 }
 0x720   : > { %3261 = vpow2.f32 %v2492_v48 }
 0x721   : > { %v3258_v44 = vpop.eup %3257  ;;  %3263 = vpow2.f32 %v2495_v49 }
 0x722   : > { %1201 = vrot.lane.b32.xlu0 %v3258_v44, %s3505_s21 }
 0x729   : > { %v3260_v45 = vpop.eup %3259 }
 0x72a   : > { %1371 = vrot.lane.b32.xlu1 %v3260_v45, %s3505_s21  ;;  %v3262_v50 = vpop.eup %3261 }
 0x72b   : > { %v1195_v51 = vadd.f32 1.0, %v3262_v50  ;;  %v3264_v52 = vpop.eup %3263 }
 0x72c   : > { %v1365_v53 = vadd.f32 1.0, %v3264_v52 }
 0x72d   : > { %3265 = vrcp.f32 %v1195_v51 }
 0x72e   : > { %3267 = vrcp.f32 %v1365_v53 }
 0x737   : > { %v3266_v47 = vpop.eup %3265 }
 0x738   : > { %v3268_v56 = vpop.eup %3267  ;;  %v1199_v59 = vmul.f32 %v3266_v47, %v3902_v17 }
 0x739   : > { %v1369_v62 = vmul.f32 %v3268_v56, %v3906_v20 }
 0x794   : > { %v1202_v54 = vpop.permute.xlu0 %1201 }
 0x795   : > { %v1204_v55 = vmul.f32 %v3266_v47, %v1202_v54 }
 0x797   : > { %1206 = vrot.lane.b32.xlu0 %v1204_v55, %s3505_s21 }
 0x79c   : > { %v1372_v57 = vpop.permute.xlu1 %1371 }
 0x79d   : > { %v1374_v58 = vmul.f32 %v3268_v56, %v1372_v57 }
 0x79f   : > { %1376 = vrot.lane.b32.xlu1 %v1374_v58, %s3505_s21 }
 0x809   : > { %v1207_v60 = vpop.permute.xlu0 %1206 }
 0x80a   : > { %v3966_v61 = vadd.f32 %v1207_v60, %v1199_v59 }
 0x80c   : > { %3269 = vtanh.f32 %v3966_v61 }
 0x811   : > { %v1377_v63 = vpop.permute.xlu1 %1376 }
 0x812   : > { %v3970_v1 = vadd.f32 %v1377_v63, %v1369_v62 }
 0x814   : > { %3271 = vtanh.f32 %v3970_v1 }
 0x816   : > { %v3270_v2 = vpop.eup %3269 }
 0x817   : > { %1212 = vrot.lane.b32.xlu0 %v3270_v2, %s3505_s21 }
 0x81e   : > { %v3272_v3 = vpop.eup %3271 }
 0x81f   : > { %1382 = vrot.lane.b32.xlu1 %v3272_v3, %s3505_s21 }
 0x889   : > { %v1213_v4 = vpop.permute.xlu0 %1212 }
 0x88a   : > { %v1215_v6 = vmul.f32 %v3266_v47, %v1213_v4  ;;  %v1853_v4 = vld [vmem:[#allocation11] sm:$0xff] (!%p2504_p10) }
 0x88c   : > { %1217 = vrot.lane.b32.xlu0 %v1215_v6, %s3506_s12  ;;  %v1854_v6 = vld [vmem:[#allocation11 + $0x8] sm:$0xff] (!%p2504_p10) }
 0x891   : > { %v1383_v7 = vpop.permute.xlu1 %1382 }
 0x892   : > { %v1385_v8 = vmul.f32 %v3268_v56, %v1383_v7  ;;  %v1848_v7 = vld [vmem:[#allocation9] sm:$0xff] (!%p2504_p10) }
 0x894   : > { %1387 = vrot.lane.b32.xlu1 %v1385_v8, %s3506_s12  ;;  %v3508_v8 = vmov (!%p2504_p10), 0.0|0.0  }
 0x8fe   : > { %v1218_v10 = vpop.permute.xlu0 %1217 }
 0x8ff   : > { %2729 = vmatmul.mubr.msk.f32.vlgmr.msra.gmra.mrb[8].mxu0 %vm741_vm3, %v1218_v10  ;;  %v3036_v10 = vpack.c.bf16 (!%p2504_p10), %v1854_v6, %v1853_v4 }
 0x900   : > { %3007 = vmatpush3.bf16.msra.mxu0 %v3860_v38  ;;  %2750 = vmatprep.mubr.msk.f32.mxu0 %vm3503_vm2, %v3504_v12 }
 0x901   : > { %3008 = vmatprep.subr.bf16.mxu0 %v3502_v5 }
 0x904   : > { %3010 = vmatpush3.bf16.msra.mxu0 %v3872_v42 }
 0x905   : > { %3017 = vmatprep.subr.bf16.mxu0 %v3502_v5 }
 0x906   : > { %v1388_v11 = vpop.permute.xlu1 %1387 }
 0x907   : > { %2751 = vmatmul.mubr.msk.f32.vlgmr.msra.gmra.mrb[8].mxu0 %vm741_vm3, %v1388_v11 }
 0x908   : > { %3019 = vmatpush3.bf16.msra.mxu0 %v3816_v9  ;;  %2772 = vmatprep.mubr.msk.f32.mxu0 %vm3503_vm2, %v3504_v12 }
 0x909   : > { %3020 = vmatprep.subr.bf16.mxu0 %v3502_v5 }
 0x90c   : > { %3022 = vmatpush3.bf16.msra.mxu0 %v3829_v14  ;;  %v722_v14 = vadd.f32 %v3881_v46, %v3842_v16 }
 0x90d   : > { %3029 = vmatprep.subr.bf16.mxu0 %v3502_v5 }
 0x90f   : > { %2773 = vmatmul.mubr.msk.f32.vlgmr.msra.gmra.mrb[10].mxu0 %vm741_vm3, %v1388_v11  ;;  %v1849_v11 = vld [vmem:[#allocation9 + $0x8] sm:$0xff] (!%p2504_p10) }
 0x910   : > { %3031 = vmatpush3.bf16.msra.mxu0 %v3918_v24  ;;  %2794 = vmatprep.mubr.msk.f32.mxu0 %vm3503_vm2, %v3504_v12 }
 0x911   : > { %3032 = vmatprep.subr.bf16.mxu0 %v3502_v5 }
 0x914   : > { %3034 = vmatpush3.bf16.msra.mxu0 %v3925_v27 }
 0x915   : > { %3035 = vmatprep.subr.bf16.mxu0 (!%p2504_p10), %v3508_v8 }
 0x9da   : > { %v1457_v9 = vpop.f32.mrb[8].mxu0 }
 0x9db   : > { %v3144_v13 = vadd.f32 %v3803_v0, %v1457_v9  ;;  %v2752_v15 = vpop.f32.mrb[9].mxu0  ;;  %v1855_v9 = vld [vmem:[#allocation11 + $0x10] sm:$0xff] (!%p2504_p10) }
 0x9dc   : > { %v3042_v15 = vpack.c.bf16 (!%p2504_p10), %v1849_v11, %v1848_v7  ;;  %v2190_v7 = vld [vmem:[#allocation14] sm:$0xff] (!%p2504_p10) }
 0x9dd   : > { %3273 = vtanh.f32 %v3144_v13  ;;  %v2497_v22 = vmul.f32 -1.442695, %v3144_v13  ;;  %v1856_v13 = vld [vmem:[#allocation11 + $0x18] sm:$0xff] (!%p2504_p10) }
 0x9e2   : > { %v1626_v17 = vpop.f32.mrb[10].mxu0 }
 0x9e3   : > { %v1630_v18 = vadd.f32 %v1626_v17, %v722_v14  ;;  %v2774_v19 = vpop.f32.mrb[11].mxu0  ;;  %v1850_v14 = vld [vmem:[#allocation9 + $0x10] sm:$0xff] (!%p2504_p10)  ;;  %v3510_v17 = vmov (!%p2504_p10), 0.0  }
 0x9e5   : > { %3275 = vtanh.f32 %v1630_v18  ;;  %v2500_v23 = vmul.f32 -1.442695, %v1630_v18  ;;  %v3039_v18 = vpack.c.bf16 (!%p2504_p10), %v1856_v13, %v1855_v9 }
 0x9e6   : > { %3277 = vpow2.f32 %v2497_v22  ;;  %v1852_v22 = vld [vmem:[%s4181_s25] sm:$0xff] (!%p2504_p10) }
 0x9e7   : > { %v3274_v20 = vpop.eup %3273  ;;  %3279 = vpow2.f32 %v2500_v23 }
 0x9e8   : > { %1470 = vrot.lane.b32.xlu0 %v3274_v20, %s3505_s21  ;;  %v2011_v20 = vld [vmem:[%s4152_s11] sm:$0xff] (!%p2504_p10) }
 0x9ef   : > { %v3276_v21 = vpop.eup %3275 }
 0x9f0   : > { %1640 = vrot.lane.b32.xlu1 %v3276_v21, %s3505_s21  ;;  %v3278_v24 = vpop.eup %3277  ;;  %v2012_v21 = vld [vmem:[%s4152_s11 + $0x8] sm:$0xff] (!%p2504_p10) }
 0x9f1   : > { %v1464_v25 = vadd.f32 1.0, %v3278_v24  ;;  %v3280_v26 = vpop.eup %3279  ;;  %v3048_v23 = vpack.c.bf16 (!%p2504_p10), %v2012_v21, %v2011_v20  ;;  %v2013_v24 = vld [vmem:[%s4152_s11 + $0x10] sm:$0xff] (!%p2504_p10)  ;;  %v2195_v20 = vld [vmem:[#allocation14 + $0x28] sm:$0xff] (!%p2504_p10) }
 0x9f2   : > { %v1634_v27 = vadd.f32 1.0, %v3280_v26 }
 0x9f3   : > { %3281 = vrcp.f32 %v1464_v25  ;;  %v2014_v25 = vld [vmem:[%s4152_s11 + $0x18] sm:$0xff] (!%p2504_p10) }
 0x9f4   : > { %3283 = vrcp.f32 %v1634_v27  ;;  %v3051_v26 = vpack.c.bf16 (!%p2504_p10), %v2014_v25, %v2013_v24  ;;  %v2015_v27 = vld [vmem:[%s4152_s11 + $0x20] sm:$0xff] (!%p2504_p10)  ;;  %v2198_v25 = vld [vmem:[#allocation14 + $0x40] sm:$0xff] (!%p2504_p10) }
 0x9fd   : > { %v3282_v16 = vpop.eup %3281 }
 0x9fe   : > { %v3284_v29 = vpop.eup %3283  ;;  %v1468_v32 = vmul.f32 %v3282_v16, %v3966_v61 }
 0x9ff   : > { %v1638_v35 = vmul.f32 %v3284_v29, %v3970_v1 }
 0xa5a   : > { %v1471_v46 = vpop.permute.xlu0 %1470 }
 0xa5b   : > { %v1473_v28 = vmul.f32 %v3282_v16, %v1471_v46 }
 0xa5d   : > { %1475 = vrot.lane.b32.xlu0 %v1473_v28, %s3505_s21  ;;  %v2017_v28 = vld [vmem:[%s4152_s11 + $0x30] sm:$0xff] (!%p2504_p10) }
 0xa62   : > { %v1641_v30 = vpop.permute.xlu1 %1640 }
 0xa63   : > { %v1643_v31 = vmul.f32 %v3284_v29, %v1641_v30 }
 0xa65   : > { %1645 = vrot.lane.b32.xlu1 %v1643_v31, %s3505_s21  ;;  %v2019_v31 = vld [vmem:[%s4152_s11 + $0x40] sm:$0xff] (!%p2504_p10) }
 0xacf   : > { %v1476_v33 = vpop.permute.xlu0 %1475 }
 0xad0   : > { %v1478_v34 = vadd.f32 %v1476_v33, %v1468_v32  ;;  %v2020_v32 = vld [vmem:[%s4152_s11 + $0x48] sm:$0xff] (!%p2504_p10) }
 0xad1   : > { %v3060_v33 = vpack.c.bf16 (!%p2504_p10), %v2020_v32, %v2019_v31  ;;  %v2118_v32 = vld [vmem:[#allocation12 + $0x70] sm:$0xff] (!%p2504_p10) }
 0xad2   : > { %3285 = vtanh.f32 %v1478_v34 }
 0xad7   : > { %v1646_v36 = vpop.permute.xlu1 %1645 }
 0xad8   : > { %v1648_v37 = vadd.f32 %v1646_v36, %v1638_v35  ;;  %v2022_v35 = vld [vmem:[%s4152_s11 + $0x58] sm:$0xff] (!%p2504_p10) }
 0xada   : > { %3287 = vtanh.f32 %v1648_v37 }
 0xadc   : > { %v3286_v39 = vpop.eup %3285 }
 0xadd   : > { %1481 = vrot.lane.b32.xlu0 %v3286_v39, %s3505_s21  ;;  %v2024_v39 = vld [vmem:[%s4152_s11 + $0x68] sm:$0xff] (!%p2504_p10) }
 0xae4   : > { %v3288_v40 = vpop.eup %3287 }
 0xae5   : > { %1651 = vrot.lane.b32.xlu1 %v3288_v40, %s3505_s21 }
 0xb4f   : > { %v1482_v41 = vpop.permute.xlu0 %1481 }
 0xb50   : > { %v1484_v43 = vmul.f32 %v3282_v16, %v1482_v41  ;;  %v2016_v16 = vld [vmem:[%s4152_s11 + $0x28] sm:$0xff] (!%p2504_p10)  ;;  %v2025_v41 = vld [vmem:[%s4152_s11 + $0x70] sm:$0xff] (!%p2504_p10) }
 0xb51   : > { %v3054_v46 = vpack.c.bf16 (!%p2504_p10), %v2016_v16, %v2015_v27  ;;  %v2200_v16 = vld [vmem:[#allocation14 + $0x50] sm:$0xff] (!%p2504_p10) }
 0xb52   : > { %1486 = vrot.lane.b32.xlu0 %v1484_v43, %s3506_s12  ;;  %v2026_v43 = vld [vmem:[%s4152_s11 + $0x78] sm:$0xff] (!%p2504_p10) }
 0xb57   : > { %v1652_v44 = vpop.permute.xlu1 %1651 }
 0xb58   : > { %v1654_v45 = vmul.f32 %v3284_v29, %v1652_v44  ;;  %v2018_v29 = vld [vmem:[%s4152_s11 + $0x38] sm:$0xff] (!%p2504_p10)  ;;  %v3069_v44 = vpack.c.bf16 (!%p2504_p10), %v2026_v43, %v2025_v41  ;;  %v2508_v41 = vld [vmem:[%s4183_s28] ss:$0 sm:$0xff] (!%p2504_p10) }
 0xb59   : > { %v3057_v30 = vpack.c.bf16 (!%p2504_p10), %v2018_v29, %v2017_v28  ;;  %v2202_v29 = vld [vmem:[#allocation14 + $0x60] sm:$0xff] (!%p2504_p10) }
 0xb5a   : > { %1656 = vrot.lane.b32.xlu1 %v1654_v45, %s3506_s12  ;;  %v2104_v45 = vld [vmem:[#allocation12] sm:$0xff] (!%p2504_p10) }
 0xbc4   : > { %v1487_v48 = vpop.permute.xlu0 %1486 }
 0xbc5   : > { %2762 = vmatmul.mubr.msk.f32.vlgmr.msra.gmra.mrb[6].mxu1 %vm741_vm3, %v1487_v48  ;;  %v2105_v48 = vld [vmem:[#allocation12 + $0x8] sm:$0xff] (!%p2504_p10) }
 0xbc6   : > { %3025 = vmatpush3.bf16.msra.mxu1 %v3860_v38  ;;  %2783 = vmatprep.mubr.msk.f32.mxu1 %vm3503_vm2, %v3504_v12 }
 0xbc7   : > { %3026 = vmatprep.subr.bf16.mxu1 %v3502_v5 }
 0xbca   : > { %3028 = vmatpush3.bf16.msra.mxu1 %v3872_v42 }
 0xbcb   : > { %3041 = vmatprep.subr.bf16.mxu1 (!%p2504_p10), %v3508_v8 }
 0xbcc   : > { %v1657_v49 = vpop.permute.xlu1 %1656 }
 0xbcd   : > { %1830 = vst.msk [vmem:[#allocation2] sm:$0xff] %vm741_vm3, %v1657_v49  ;;  %2784 = vmatmul.mubr.msk.f32.vlgmr.msra.gmra.mrb[6].mxu1 %vm741_vm3, %v1657_v49  ;;  %v3072_v49 = vpack.c.bf16 (!%p2504_p10), %v2105_v48, %v2104_v45 }
 0xbce   : > { %2816 = vmatprep.mubr.msk.f32.mxu1 (!%p2504_p10), %vm3509_vm4, %v3510_v17  ;;  %3043 = vmatpush3.bf16.msra.mxu1 (!%p2504_p10), %v3042_v15  ;;  %v2192_v15 = vld [vmem:[#allocation14 + $0x10] sm:$0xff] (!%p2504_p10) }
 0xbcf   : > { %3044 = vmatprep.subr.bf16.mxu1 (!%p2504_p10), %v3508_v8 }
 0xca0   : > { %v1726_v50 = vpop.f32.mrb[6].mxu1 }
 0xca1   : > { %v3145_v51 = vadd.f32 %v3803_v0, %v1726_v50  ;;  %v2785_v52 = vpop.f32.mrb[7].mxu1  ;;  %v2106_v50 = vld [vmem:[#allocation12 + $0x10] sm:$0xff] (!%p2504_p10) }
 0xca3   : > { %3289 = vtanh.f32 %v3145_v51  ;;  %v2502_v38 = vmul.f32 -1.442695, %v3145_v51  ;;  %v2107_v51 = vld [vmem:[#allocation12 + $0x18] sm:$0xff] (!%p2504_p10) }
 0xca4   : > { %v3075_v52 = vpack.c.bf16 (!%p2504_p10), %v2107_v51, %v2106_v50  ;;  %v2284_v50 = vld [vmem:[#allocation15 + $0x18] sm:$0xff] (!%p2504_p10) }
 0xca5   : > { %3291 = vpow2.f32 %v2502_v38  ;;  %v2109_v38 = vld [vmem:[#allocation12 + $0x28] sm:$0xff] (!%p2504_p10) }
 0xcad   : > { %v3290_v53 = vpop.eup %3289 }
 0xcae   : > { %1739 = vrot.lane.b32.xlu0 %v3290_v53, %s3505_s21  ;;  %v2108_v53 = vld [vmem:[#allocation12 + $0x20] sm:$0xff] (!%p2504_p10) }
 0xcaf   : > { %v3292_v12 = vpop.eup %3291 }
 0xcb0   : > { %v1733_v47 = vadd.f32 1.0, %v3292_v12  ;;  %v3078_v12 = vpack.c.bf16 (!%p2504_p10), %v2109_v38, %v2108_v53  ;;  %v2286_v53 = vld [vmem:[#allocation15 + $0x28] sm:$0xff] (!%p2504_p10) }
 0xcb2   : > { %3293 = vrcp.f32 %v1733_v47  ;;  %v2110_v47 = vld [vmem:[#allocation12 + $0x30] sm:$0xff] (!%p2504_p10) }
 0xcbc   : > { %v3294_v5 = vpop.eup %3293 }
 0xcbd   : > { %v1737_v55 = vmul.f32 %v3294_v5, %v1478_v34  ;;  %v2021_v34 = vld [vmem:[%s4152_s11 + $0x50] sm:$0xff] (!%p2504_p10) }
 0xcbe   : > { %v3063_v36 = vpack.c.bf16 (!%p2504_p10), %v2022_v35, %v2021_v34  ;;  %v2204_v34 = vld [vmem:[#allocation14 + $0x70] sm:$0xff] (!%p2504_p10) }
 0xd20   : > { %v1740_v42 = vpop.permute.xlu0 %1739 }
 0xd21   : > { %v1742_v54 = vmul.f32 %v3294_v5, %v1740_v42 }
 0xd23   : > { %1744 = vrot.lane.b32.xlu1 %v1742_v54, %s3505_s21  ;;  %v2112_v54 = vld [vmem:[#allocation12 + $0x40] sm:$0xff] (!%p2504_p10) }
 0xd95   : > { %v1745_v56 = vpop.permute.xlu1 %1744 }
 0xd96   : > { %v1747_v57 = vadd.f32 %v1745_v56, %v1737_v55  ;;  %v2113_v55 = vld [vmem:[#allocation12 + $0x48] sm:$0xff] (!%p2504_p10) }
 0xd97   : > { %v3084_v56 = vpack.c.bf16 (!%p2504_p10), %v2113_v55, %v2112_v54  ;;  %v2290_v54 = vld [vmem:[#allocation15 + $0x48] sm:$0xff] (!%p2504_p10)  ;;  %v2291_v55 = vld [vmem:[#allocation15 + $0x50] sm:$0xff] (!%p2504_p10) }
 0xd98   : > { %3295 = vtanh.f32 %v1747_v57 }
 0xda2   : > { %v3296_v58 = vpop.eup %3295 }
 0xda3   : > { %1750 = vrot.lane.b32.xlu0 %v3296_v58, %s3505_s21  ;;  %v2115_v58 = vld [vmem:[#allocation12 + $0x58] sm:$0xff] (!%p2504_p10) }
 0xda7   : > { %1832 = vrot.lane.b32.xlu0 %v1648_v37, %s3507_s23  ;;  %v2023_v37 = vld [vmem:[%s4152_s11 + $0x60] sm:$0xff] (!%p2504_p10) }
 0xda8   : > { %v3066_v40 = vpack.c.bf16 (!%p2504_p10), %v2024_v39, %v2023_v37  ;;  %v2281_v39 = vld [vmem:[#allocation15] sm:$0xff] (!%p2504_p10) }
 0xe15   : > { %v1751_v59 = vpop.permute.xlu0 %1750 }
 0xe16   : > { %v1753_v60 = vmul.f32 %v3294_v5, %v1751_v59  ;;  %v2111_v5 = vld [vmem:[#allocation12 + $0x38] sm:$0xff] (!%p2504_p10) }
 0xe17   : > { %v3081_v42 = vpack.c.bf16 (!%p2504_p10), %v2111_v5, %v2110_v47  ;;  %v2288_v47 = vld [vmem:[#allocation15 + $0x38] sm:$0xff] (!%p2504_p10) }
 0xe18   : > { %1755 = vrot.lane.b32.xlu1 %v1753_v60, %s3506_s12  ;;  %v2116_v60 = vld [vmem:[#allocation12 + $0x60] sm:$0xff] (!%p2504_p10) }
 0xe19   : > { %v1833_v61 = vpop.permute.xlu0 %1832 }
 0xe1a   : > { %1835 = vst.msk [vmem:[#allocation3] sm:$0xff] %vm741_vm3, %v1833_v61  ;;  %v2117_v61 = vld [vmem:[#allocation12 + $0x68] sm:$0xff] (!%p2504_p10) }
 0xe1c   : > { %1839 = vrot.lane.b32.xlu1 %v1747_v57, %s3507_s23  ;;  %v2114_v57 = vld [vmem:[#allocation12 + $0x50] sm:$0xff] (!%p2504_p10)  ;;  %s4182_s23 = sld [smem:[#allocation24_spill]] (!%p2504_p10) }
 0xe1d   : > { %v3087_v59 = vpack.c.bf16 (!%p2504_p10), %v2115_v58, %v2114_v57  ;;  %v2293_v58 = vld [vmem:[#allocation15 + $0x60] sm:$0xff] (!%p2504_p10) }
 0xe8a   : > { %v1756_v62 = vpop.permute.xlu1 %1755 }
 0xe8b   : > { %2795 = vmatmul.mubr.msk.f32.vlgmr.msra.gmra.mrb[12].mxu0 %vm741_vm3, %v1756_v62 }
 0xe8c   : > { %2805 = vmatprep.mubr.msk.f32.mxu0 (!%p2504_p10), %vm3509_vm4, %v3510_v17  ;;  %3037 = vmatpush3.bf16.msra.mxu0 (!%p2504_p10), %v3036_v10  ;;  %v2191_v10 = vld [vmem:[#allocation14 + $0x8] sm:$0xff] (!%p2504_p10) }
 0xe8d   : > { %3038 = vmatprep.subr.bf16.mxu0 (!%p2504_p10), %v3508_v8  ;;  %v3096_v13 = vpack.c.bf16 (!%p2504_p10), %v2191_v10, %v2190_v7 }
 0xe8e   : > { %v1840_v63 = vpop.permute.xlu1 %1839 }
 0xe8f   : > { %1842 = vst.msk [vmem:[#allocation5] sm:$0xff] %vm741_vm3, %v1840_v63 }
 0xe90   : > { %3040 = vmatpush3.bf16.msra.mxu0 (!%p2504_p10), %v3039_v18 }
 0xe91   : > { %3047 = vmatprep.subr.bf16.mxu0 (!%p2504_p10), %v3508_v8 }
 0xe93   : > { %2806 = vmatmul.mubr.msk.f32.vlgmr.msra.gmra.mrb[0].mxu0 (!%p2504_p10), %vm741_vm3, %v1852_v22  ;;  %v2196_v22 = vld [vmem:[#allocation14 + $0x30] sm:$0xff] (!%p2504_p10) }
 0xe94   : > { %3049 = vmatpush3.bf16.msra.mxu0 (!%p2504_p10), %v3048_v23  ;;  %2851 = vmatprep.mubr.msk.f32.mxu0 (!%p2504_p10), %vm3509_vm4, %v3510_v17  ;;  %v2197_v23 = vld [vmem:[#allocation14 + $0x38] sm:$0xff] (!%p2504_p10) }
 0xe95   : > { %3050 = vmatprep.subr.bf16.mxu0 (!%p2504_p10), %v3508_v8  ;;  %v3105_v24 = vpack.c.bf16 (!%p2504_p10), %v2197_v23, %v2196_v22 }
 0xe98   : > { %3052 = vmatpush3.bf16.msra.mxu0 (!%p2504_p10), %v3051_v26  ;;  %v2199_v26 = vld [vmem:[#allocation14 + $0x48] sm:$0xff] (!%p2504_p10) }
 0xe99   : > { %3053 = vmatprep.subr.bf16.mxu0 (!%p2504_p10), %v3508_v8  ;;  %v3108_v27 = vpack.c.bf16 (!%p2504_p10), %v2199_v26, %v2198_v25 }
 0xe9c   : > { %3055 = vmatpush3.bf16.msra.mxu0 (!%p2504_p10), %v3054_v46  ;;  %v2201_v46 = vld [vmem:[#allocation14 + $0x58] sm:$0xff] (!%p2504_p10) }
 0xe9d   : > { %3056 = vmatprep.subr.bf16.mxu0 (!%p2504_p10), %v3508_v8  ;;  %v3111_v28 = vpack.c.bf16 (!%p2504_p10), %v2201_v46, %v2200_v16 }
 0xea0   : > { %3058 = vmatpush3.bf16.msra.mxu0 (!%p2504_p10), %v3057_v30  ;;  %v2203_v30 = vld [vmem:[#allocation14 + $0x68] sm:$0xff] (!%p2504_p10) }
 0xea1   : > { %3059 = vmatprep.subr.bf16.mxu0 (!%p2504_p10), %v3508_v8  ;;  %v3114_v31 = vpack.c.bf16 (!%p2504_p10), %v2203_v30, %v2202_v29 }
 0xea4   : > { %3061 = vmatpush3.bf16.msra.mxu0 (!%p2504_p10), %v3060_v33  ;;  %v2119_v33 = vld [vmem:[#allocation12 + $0x78] sm:$0xff] (!%p2504_p10) }
 0xea5   : > { %3062 = vmatprep.subr.bf16.mxu0 (!%p2504_p10), %v3508_v8  ;;  %v3093_v35 = vpack.c.bf16 (!%p2504_p10), %v2119_v33, %v2118_v32 }
 0xea8   : > { %3064 = vmatpush3.bf16.msra.mxu0 (!%p2504_p10), %v3063_v36  ;;  %v2205_v36 = vld [vmem:[#allocation14 + $0x78] sm:$0xff] (!%p2504_p10) }
 0xea9   : > { %3065 = vmatprep.subr.bf16.mxu0 (!%p2504_p10), %v3508_v8  ;;  %v3117_v37 = vpack.c.bf16 (!%p2504_p10), %v2205_v36, %v2204_v34 }
 0xeac   : > { %3067 = vmatpush3.bf16.msra.mxu0 (!%p2504_p10), %v3066_v40  ;;  %v2282_v40 = vld [vmem:[#allocation15 + $0x8] sm:$0xff] (!%p2504_p10) }
 0xead   : > { %3068 = vmatprep.subr.bf16.mxu0 (!%p2504_p10), %v3508_v8 }
 0xeb0   : > { %3070 = vmatpush3.bf16.msra.mxu0 (!%p2504_p10), %v3069_v44  ;;  %v3120_v44 = vpack.c.bf16 (!%p2504_p10), %v2282_v40, %v2281_v39 }
 0xeb1   : > { %3095 = vmatprep.subr.bf16.mxu0 (!%p2504_p10), %v3508_v8 }
 0xf5b   : > { %1847 = sbr.rel (%p2504_p10) target bundleno = 4833 (0x12e1), region = 116 }
 0xf5e   : > { %v1825_v1 = vpop.f32.mrb[12].mxu0 }
 0xf5f   : > { %v1826_v2 = vadd.f32 %v3803_v0, %v1825_v1  ;;  %v2796_v3 = vpop.f32.mrb[13].mxu0  ;;  %v1851_v0 = vld [vmem:[#allocation9 + $0x18] sm:$0xff] (!%p2504_p10) }
 0xf60   : > { %v3045_v19 = vpack.c.bf16 (!%p2504_p10), %v1851_v0, %v1850_v14  ;;  %v2193_v14 = vld [vmem:[#allocation14 + $0x18] sm:$0xff] (!%p2504_p10) }
 0xf61   : > { %1843 = vst [vmem:[#allocation6] sm:$0xff] %v1826_v2  ;;  %v2507_v2 = vld [vmem:[%s4182_s23] ss:$0 sm:$0xff] (!%p2504_p10)  ;;  %v3099_v18 = vpack.c.bf16 (!%p2504_p10), %v2193_v14, %v2192_v15 }
 0xf62   : > { %3046 = vmatpush3.bf16.msra.mxu1 %v3045_v19  ;;  %v2194_v19 = vld [vmem:[#allocation14 + $0x20] sm:$0xff] }
 0xf63   : > { %3071 = vmatprep.subr.bf16.mxu1 %v3508_v8  ;;  %v3102_v21 = vpack.c.bf16 %v2195_v20, %v2194_v19 }
 0xf65   : > { %2817 = vmatmul.mubr.msk.f32.vlgmr.msra.gmra.mrb[0].mxu1 %vm741_vm3, %v1756_v62  ;;  %v3090_v62 = vpack.c.bf16 %v2117_v61, %v2116_v60  ;;  %v2295_v61 = vld [vmem:[#allocation15 + $0x70] sm:$0xff] }
 0xf66   : > { %2886 = vmatprep.mubr.msk.f32.mxu1 %vm3509_vm4, %v3510_v17  ;;  %3073 = vmatpush3.bf16.msra.mxu1 %v3072_v49  ;;  %v1926_v63 = vpop.f32.mrb[0].mxu0  ;;  %v2283_v49 = vld [vmem:[#allocation15 + $0x10] sm:$0xff] }
 0xf67   : > { %3074 = vmatprep.subr.bf16.mxu1 %v3508_v8  ;;  %v2807_v3 = vpop.f32.mrb[1].mxu0  ;;  %v3123_v51 = vpack.c.bf16 %v2284_v50, %v2283_v49 }
 0xf6a   : > { %3076 = vmatpush3.bf16.msra.mxu1 %v3075_v52  ;;  %v2285_v52 = vld [vmem:[#allocation15 + $0x20] sm:$0xff] }
 0xf6b   : > { %3077 = vmatprep.subr.bf16.mxu1 %v3508_v8  ;;  %v3126_v38 = vpack.c.bf16 %v2286_v53, %v2285_v52 }
 0xf6e   : > { %3079 = vmatpush3.bf16.msra.mxu1 %v3078_v12  ;;  %v2287_v12 = vld [vmem:[#allocation15 + $0x30] sm:$0xff] }
 0xf6f   : > { %3080 = vmatprep.subr.bf16.mxu1 %v3508_v8  ;;  %v3129_v5 = vpack.c.bf16 %v2288_v47, %v2287_v12 }
 0xf72   : > { %3082 = vmatpush3.bf16.msra.mxu1 %v3081_v42  ;;  %v2289_v42 = vld [vmem:[#allocation15 + $0x40] sm:$0xff] }
 0xf73   : > { %3083 = vmatprep.subr.bf16.mxu1 %v3508_v8 }
 0xf76   : > { %3085 = vmatpush3.bf16.msra.mxu1 %v3084_v56  ;;  %v2292_v56 = vld [vmem:[#allocation15 + $0x58] sm:$0xff] }
 0xf77   : > { %3086 = vmatprep.subr.bf16.mxu1 %v3508_v8  ;;  %v3135_v57 = vpack.c.bf16 %v2292_v56, %v2291_v55 }
 0xf7a   : > { %3088 = vmatpush3.bf16.msra.mxu1 %v3087_v59  ;;  %v2294_v59 = vld [vmem:[#allocation15 + $0x68] sm:$0xff] }
 0xf7b   : > { %3089 = vmatprep.subr.bf16.mxu1 %v3508_v8  ;;  %v3138_v60 = vpack.c.bf16 %v2294_v59, %v2293_v58 }
 0xf7e   : > { %3091 = vmatpush3.bf16.msra.mxu1 %v3090_v62  ;;  %v2296_v62 = vld [vmem:[#allocation15 + $0x78] sm:$0xff] }
 0xf7f   : > { %3092 = vmatprep.subr.bf16.mxu1 %v3508_v8 }
 0xf82   : > { %3094 = vmatpush3.bf16.msra.mxu1 %v3093_v35 }
 0xf83   : > { %3119 = vmatprep.subr.bf16.mxu1 %v3508_v8 }
0x1038   : > { %v1996_v1 = vpop.f32.mrb[0].mxu1 }
0x1039   : > { %v1997_v4 = vadd.f32 %v1996_v1, %v1926_v63  ;;  %v2818_v6 = vpop.f32.mrb[1].mxu1  ;;  %v3141_v63 = vpack.c.bf16 %v2296_v62, %v2295_v61 }
0x103b   : > { %v2007_v11 = vadd.f32 %v2507_v2, %v1997_v4 }
0x103d   : > { %v2009_v9 = vmul.f32 0.01, %v2007_v11  ;;  %vm2008_vm5 = vcmp.ge.f32.partialorder %v2007_v11, 0.0 }
0x103f   : > { %v2010_v0 = vsel %vm2008_vm5, %v2007_v11, %v2009_v9 }
0x1040   : > { %2852 = vmatmul.mubr.f32.vlgmr.msra.gmra.mrb[2].mxu0 %v2010_v0 }
0x1041   : > { %3097 = vmatpush3.bf16.msra.mxu0 %v3096_v13  ;;  %2921 = vmatprep.mubr.msk.f32.mxu0 %vm3509_vm4, %v3510_v17 }
0x1042   : > { %3098 = vmatprep.subr.bf16.mxu0 %v3508_v8 }
0x1045   : > { %3100 = vmatpush3.bf16.msra.mxu0 %v3099_v18 }
0x1046   : > { %3101 = vmatprep.subr.bf16.mxu0 %v3508_v8 }
0x1049   : > { %3103 = vmatpush3.bf16.msra.mxu0 %v3102_v21 }
0x104a   : > { %3104 = vmatprep.subr.bf16.mxu0 %v3508_v8 }
0x104d   : > { %3106 = vmatpush3.bf16.msra.mxu0 %v3105_v24 }
0x104e   : > { %3107 = vmatprep.subr.bf16.mxu0 %v3508_v8 }
0x1051   : > { %3109 = vmatpush3.bf16.msra.mxu0 %v3108_v27 }
0x1052   : > { %3110 = vmatprep.subr.bf16.mxu0 %v3508_v8 }
0x1055   : > { %3112 = vmatpush3.bf16.msra.mxu0 %v3111_v28 }
0x1056   : > { %3113 = vmatprep.subr.bf16.mxu0 %v3508_v8 }
0x1059   : > { %3115 = vmatpush3.bf16.msra.mxu0 %v3114_v31 }
0x105a   : > { %3116 = vmatprep.subr.bf16.mxu0 %v3508_v8 }
0x105d   : > { %3118 = vmatpush3.bf16.msra.mxu0 %v3117_v37 }
0x1113   : > { %v2100_v43 = vpop.f32.mrb[2].mxu0 }
0x1114   : > { %v2101_v45 = vadd.f32 %v2508_v41, %v2100_v43  ;;  %v2853_v48 = vpop.f32.mrb[3].mxu0 }
0x1116   : > { %2887 = vmatmul.mubr.f32.vlgmr.msra.gmra.mrb[2].mxu1 %v2101_v45  ;;  %2922 = vmatmul.mubr.f32.vlgmr.msra.gmra.mrb[4].mxu0 %v2101_v45 }
0x1117   : > { %3121 = vmatpush3.bf16.msra.mxu1 %v3120_v44  ;;  %2956 = vmatprep.mubr.msk.f32.mxu1 %vm3509_vm4, %v3510_v17  ;;  %v3132_v17 = vpack.c.bf16 %v2290_v54, %v2289_v42 }
0x1118   : > { %3122 = vmatprep.subr.bf16.mxu1 %v3508_v8 }
0x111b   : > { %3124 = vmatpush3.bf16.msra.mxu1 %v3123_v51 }
0x111c   : > { %3125 = vmatprep.subr.bf16.mxu1 %v3508_v8 }
0x111f   : > { %3127 = vmatpush3.bf16.msra.mxu1 %v3126_v38 }
0x1120   : > { %3128 = vmatprep.subr.bf16.mxu1 %v3508_v8 }
0x1123   : > { %3130 = vmatpush3.bf16.msra.mxu1 %v3129_v5 }
0x1124   : > { %3131 = vmatprep.subr.bf16.mxu1 %v3508_v8 }
0x1127   : > { %3133 = vmatpush3.bf16.msra.mxu1 %v3132_v17 }
0x1128   : > { %3134 = vmatprep.subr.bf16.mxu1 %v3508_v8 }
0x112b   : > { %3136 = vmatpush3.bf16.msra.mxu1 %v3135_v57 }
0x112c   : > { %3137 = vmatprep.subr.bf16.mxu1 %v3508_v8 }
0x112f   : > { %3139 = vmatpush3.bf16.msra.mxu1 %v3138_v60 }
0x1130   : > { %3140 = vmatprep.subr.bf16.mxu1 %v3508_v8 }
0x1133   : > { %3142 = vmatpush3.bf16.msra.mxu1 %v3141_v63 }
0x11e9   : > { %v2186_v1 = vpop.f32.mrb[2].mxu1  ;;  %v2272_v2 = vpop.f32.mrb[4].mxu0 }
0x11ea   : > { %v2276_v3 = vmax.f32 %v2186_v1, %v2272_v2  ;;  %v2888_v4 = vpop.f32.mrb[3].mxu1  ;;  %v2923_v6 = vpop.f32.mrb[5].mxu0 }
0x11ec   : > { %v2277_v7 = vmax.f32 %v2101_v45, %v2276_v3 }
0x11ee   : > { %v2278_v10 = vsub.f32 %v2101_v45, %v2277_v7 }
0x11f0   : > { %v2279_v11 = vmul.f32 1.442695, %v2278_v10 }
0x11f2   : > { %3297 = vpow2.f32 %v2279_v11 }
0x11fc   : > { %v3298_v9 = vpop.eup %3297 }
0x11fd   : > { %2957 = vmatmul.mubr.f32.vlgmr.msra.gmra.mrb[4].mxu1 %v3298_v9 }
0x12d0   : > { %v2363_v13 = vpop.f32.mrb[4].mxu1 }
0x12d1   : > { %3299 = vlog2.f32 %v2363_v13  ;;  %v2958_v15 = vpop.f32.mrb[5].mxu1 }
0x12db   : > { %v3300_v14 = vpop.eup %3299 }
0x12dc   : > { %v2368_v0 = vmul.f32 0.6931472, %v3300_v14 }
0x12de   : > { %v2369_v18 = vsub.f32 %v2278_v10, %v2368_v0 }
0x12e0   : > { %2370 = vst [vmem:[%s4184_s27] sm:$0xff] %v2369_v18 }
0x12e1 PF: > { %s4185_s25 = sld [smem:[#allocation21_spill]] }
0x12e7   : > { %s30_s21 = sadd.s32 1, %s4185_s25  }
0x12e8   : > { %p27_p11 = scmp.ge.s32.totalorder %s30_s21, 4  }
0x12ea   :  { %29 = sbr.rel (!%p27_p11) target bundleno = 10 (0xa), region = 143 }
0x12f1   :  { %2382 = vsyncpa [#allocation8], 1 }
0x12f2   :  { %2384 = vsyncpa [#allocation8 + $0x1], 1 }
0x12f3   :  { %2385 = vsyncpa [#allocation10], 1 }
0x12f4   :  { %2386 = vsyncpa [#allocation13], 1 }
0x12f5   :  { %2387 = vsyncpa [#allocation16], 1 }

</bundles_post_ra>
